<compile_context>
chip_gen: v6e
topology: v6e:2x2x1
jax: 0.10.0
libtpu: 0.0.40
codegen_flags: <defaults>
</compile_context>

<pallas_src>
import math

import jax
import jax.numpy as jnp
from jax.experimental import pallas as pl
from jax.experimental.pallas import tpu as pltpu


def _bert_classifier_kernel(
    vl_ref,      # VMEM int32 [Bt, 1]      : valid_length for this batch block
    hcls_ref,    # VMEM cdt   [Bt, H]      : CLS-token hidden states
    hkey_ref,    # VMEM cdt   [Bt, Sk, H]  : key/value hidden-state chunk
    wq_ref, bq_ref,
    wkv_ref, bkv_ref,        # fused K|V projection (H, 2H) (prepared once)
    wo_ref, bo_ref,
    wp_ref, bp_ref,          # pooler dense
    wc_ref, bc_ref,          # classifier head, lane-padded to C_pad
    out_ref,     # VMEM f32 [Bt, C_pad]
    q_sc,        # VMEM cdt [Bt, H]  : CLS query (computed once per batch block)
    m_sc,        # VMEM f32 [Bt, 1]  : running max
    l_sc,        # VMEM f32 [Bt, 1]  : running softmax denominator
    acc_sc,      # VMEM f32 [Bt, H]  : running P@V accumulator
):
    j = pl.program_id(1)                       # key-chunk index (reduction axis)
    Bt, Sk, H = hkey_ref.shape
    cdt = wq_ref.dtype
    scale = 1.0 / math.sqrt(H)

    # --- per-batch-block init + CLS query projection (first key chunk only) ---
    @pl.when(j == 0)
    def _():
        m_sc[...] = jnp.full_like(m_sc, -jnp.inf)
        l_sc[...] = jnp.zeros_like(l_sc)
        acc_sc[...] = jnp.zeros_like(acc_sc)
        q = jnp.dot(hcls_ref[...], wq_ref[...],
                    preferred_element_type=jnp.float32) + bq_ref[...]
        q_sc[...] = q.astype(q_sc.dtype)

    # --- fused K|V projection for this key chunk (one MXU matmul) ---
    h2d = hkey_ref[...].reshape(Bt * Sk, H)
    kv = jnp.dot(h2d, wkv_ref[...],
                 preferred_element_type=jnp.float32) + bkv_ref[...]
    kv = kv.astype(cdt).reshape(Bt, Sk, 2 * H)   # cast once before slicing
    k = kv[:, :, :H]                             # lane-aligned split at real H=768
    v = kv[:, :, H:]

    # --- per-batch CLS scores against this chunk (no cross-batch waste) ---
    # NOTE: einsum contracts the last dims (same pattern as the reference flash
    # kernel); scores FLOPs are ~1/(2H) of the K|V projection, so any residual
    # layout cost here is negligible.
    q3 = q_sc[...].reshape(Bt, 1, H)
    s = jnp.einsum("bqh,bkh->bqk", q3, k,
                   preferred_element_type=jnp.float32)[:, 0, :] * scale  # (Bt, Sk) f32

    # gen_attention_mask: CLS row b attends only to its first valid_length[b] keys.
    kpos = j * Sk + jax.lax.broadcasted_iota(jnp.int32, (Bt, Sk), 1)
    s = jnp.where(kpos < vl_ref[...], s, -1e30)   # f32 masking (bf16-unsafe constant)

    # --- online softmax update (all statistics in f32) ---
    m_prev = m_sc[...]
    m_new = jnp.maximum(m_prev, jnp.max(s, axis=-1, keepdims=True))
    alpha = jnp.exp(m_prev - m_new)
    p = jnp.exp(s - m_new)
    l_sc[...] = alpha * l_sc[...] + jnp.sum(p, axis=-1, keepdims=True)
    p3 = p.astype(cdt).reshape(Bt, 1, Sk)
    pv = jnp.einsum("bqk,bkh->bqh", p3, v,
                    preferred_element_type=jnp.float32)[:, 0, :]          # (Bt, H) f32
    acc_sc[...] = alpha * acc_sc[...] + pv
    m_sc[...] = m_new

    # --- epilogue on the last key chunk: Wo -> pooler(tanh) -> classifier ---
    @pl.when(j == pl.num_programs(1) - 1)
    def _():
        ctx = acc_sc[...] * pl.reciprocal(l_sc[...], approx=True)         # (Bt, H) f32
        attn = jnp.dot(ctx.astype(cdt), wo_ref[...],
                       preferred_element_type=jnp.float32) + bo_ref[...]
        pooled = jnp.tanh(jnp.dot(attn.astype(cdt), wp_ref[...],
                                  preferred_element_type=jnp.float32) + bp_ref[...])
        logits = jnp.dot(pooled.astype(cdt), wc_ref[...],
                         preferred_element_type=jnp.float32) + bc_ref[...]
        out_ref[...] = logits.astype(out_ref.dtype)     # lane-dense (Bt, C_pad) store


def prepare_params(params, compute_dtype=jnp.bfloat16):
    """One-time parameter prep: dtype casts, fused K|V concat, lane-padded head.

    Call once and reuse the result across forward calls (hoists per-call
    concatenation / padding HBM traffic out of the forward path).
    """
    cdt = compute_dtype
    H = params["wq"].shape[0]
    C = params["wc"].shape[1]
    C_pad = ((C + 127) // 128) * 128
    wc = jnp.zeros((H, C_pad), cdt).at[:, :C].set(params["wc"].astype(cdt))
    bc = jnp.zeros((1, C_pad), jnp.float32).at[:, :C].set(
        params["bc"].astype(jnp.float32))
    return {
        "num_classes": C,
        # Embeddings emitted directly in compute dtype -> halves [B,S,H] HBM traffic.
        "word_emb": params["word_emb"].astype(cdt),
        "seg_emb": params["seg_emb"].astype(cdt),
        "pos_emb": params["pos_emb"].astype(cdt),
        "wq": params["wq"].astype(cdt), "bq": params["bq"].astype(jnp.float32),
        "wkv": jnp.concatenate([params["wk"], params["wv"]], axis=1).astype(cdt),
        "bkv": jnp.concatenate([params["bk"], params["bv"]], axis=1).astype(jnp.float32),
        "wo": params["wo"].astype(cdt), "bo": params["bo"].astype(jnp.float32),
        "wp": params["wp"].astype(cdt), "bp": params["bp"].astype(jnp.float32),
        "wc": wc, "bc": bc,
    }


def _pick_block(total, preferred, align):
    """Largest divisor of `total` that is <= preferred and a multiple of `align`."""
    b = min(max(preferred, align), total)
    b -= b % align
    while b >= align:
        if total % b == 0:
            return b
        b -= align
    return total   # fall back to the full extent (always tiling-legal)


def bert_classifier_forward(token_ids, valid_length, segment_ids, prepped,
                            *, block_b=None, block_s=None):
    """token_ids/segment_ids: [B, S] int32, valid_length: [B] int32 -> logits [B, C]."""
    B, S = token_ids.shape
    wq = prepped["wq"]
    cdt = wq.dtype
    H = wq.shape[0]
    C = prepped["num_classes"]
    C_pad = prepped["wc"].shape[1]

    # Sublane alignment for the compute dtype (bf16 packs 16 rows/vreg, f32 packs 8).
    sub = 16 if cdt == jnp.bfloat16 else 8
    if block_b is None:
        # nb >= 2 whenever possible so megacore (v7x) and the DMA pipeline engage.
        # Cap Bt so 2x double-buffered key chunks + single-buffered weights stay
        # inside ~48 MiB on v7x at real sizes (v6e/v5e can afford ~2x more).
        block_b = _pick_block(B, min(max(B // 2, sub), 32), sub)
    if block_s is None:
        block_s = _pick_block(S, 128, sub)
    Bt, Sk = block_b, block_s
    assert B % Bt == 0 and S % Sk == 0, "block sizes must divide (B, S)"
    nb, nk = B // Bt, S // Sk

    # Embedding gathers stay in plain JAX glue (emitted in the compute dtype).
    h = (prepped["word_emb"][token_ids]
         + prepped["seg_emb"][segment_ids]
         + prepped["pos_emb"][None, :S, :]).astype(cdt)        # [B, S, H]
    h_cls = h[:, 0, :]                                          # CLS rows only
    vl2d = valid_length.astype(jnp.int32).reshape(B, 1)

    bq, wkv, bkv = prepped["bq"], prepped["wkv"], prepped["bkv"]
    wo, bo, wp, bp = prepped["wo"], prepped["bo"], prepped["wp"], prepped["bp"]
    wc_p, bc_p = prepped["wc"], prepped["bc"]

    # Constant-index weight blocks: single buffer (no wasted double-buffer VMEM).
    def const(shape):
        return pl.BlockSpec(shape, lambda i, j: (0, 0), pipeline_mode=pl.Buffered(1))

    in_specs = [
        pl.BlockSpec((Bt, 1), lambda i, j: (i, 0)),           # valid_length
        pl.BlockSpec((Bt, H), lambda i, j: (i, 0)),           # CLS hidden states
        pl.BlockSpec((Bt, Sk, H), lambda i, j: (i, j, 0)),    # key/value chunk (streamed)
        const((H, H)), const((1, H)),                         # Wq, bq
        const((H, 2 * H)), const((1, 2 * H)),                 # W_kv, b_kv (fused)
        const((H, H)), const((1, H)),                         # Wo, bo
        const((H, H)), const((1, H)),                         # Wp, bp (pooler)
        const((H, C_pad)), const((1, C_pad)),                 # Wc, bc (lane-padded)
    ]
    out_spec = pl.BlockSpec((Bt, C_pad), lambda i, j: (i, 0))

    operands = [vl2d, h_cls, h, wq, bq, wkv, bkv, wo, bo, wp, bp, wc_p, bc_p]

    flops = (2 * B * S * H * (2 * H)      # fused K|V projection (dominant term)
             + 2 * B * H * H              # CLS query projection
             + 2 * B * S * H              # per-batch CLS scores
             + 2 * B * S * H              # P @ V
             + 2 * B * H * H              # Wo
             + 2 * B * H * H              # pooler
             + 2 * B * H * C_pad)         # classifier
    transcendentals = B * S + B * nk + B * H                   # exp(p), exp(alpha), tanh
    bytes_accessed = (sum(int(a.size) * a.dtype.itemsize for a in operands)
                      + B * C_pad * 4)

    out = pl.pallas_call(
        _bert_classifier_kernel,
        out_shape=jax.ShapeDtypeStruct((B, C_pad), jnp.float32),
        grid=(nb, nk),
        in_specs=in_specs,
        out_specs=out_spec,
        scratch_shapes=[
            pltpu.VMEM((Bt, H), cdt),           # CLS query
            pltpu.VMEM((Bt, 1), jnp.float32),   # running max
            pltpu.VMEM((Bt, 1), jnp.float32),   # running denominator
            pltpu.VMEM((Bt, H), jnp.float32),   # P@V accumulator
        ],
        compiler_params=pltpu.CompilerParams(
            dimension_semantics=("parallel", "arbitrary"),
            vmem_limit_bytes=48 * 1024 * 1024,  # headroom below v7x's 64 MiB physical
        ),
        cost_estimate=pl.CostEstimate(flops=int(flops),
                                      transcendentals=int(transcendentals),
                                      bytes_accessed=int(bytes_accessed)),
    )(*operands)
    return out[:, :C]


def _reference_forward(token_ids, valid_length, segment_ids, params):
    """Pure-JAX f32 reference for correctness checking."""
    B, S = token_ids.shape
    H = params["word_emb"].shape[1]
    h = (params["word_emb"][token_ids]
         + params["seg_emb"][segment_ids]
         + params["pos_emb"][None, :S, :])
    mask = (jnp.arange(S)[None, :] < valid_length[:, None]).astype(jnp.float32)
    q = h @ params["wq"] + params["bq"]
    k = h @ params["wk"] + params["bk"]
    v = h @ params["wv"] + params["bv"]
    scores = jnp.einsum("bqh,bkh->bqk", q, k) / math.sqrt(H)
    scores = scores + (mask[:, None, :] - 1.0) * 1e9
    p = jax.nn.softmax(scores, axis=-1)
    ctx = jnp.einsum("bqk,bkh->bqh", p, v)
    attn_out = ctx @ params["wo"] + params["bo"]
    pooled = jnp.tanh(attn_out[:, 0, :] @ params["wp"] + params["bp"])
    return pooled @ params["wc"] + params["bc"]


def _init_params(key, vocab, S, H, C):
    keys = jax.random.split(key, 16)
    scale = 0.02
    return {
        "word_emb": scale * jax.random.normal(keys[0], (vocab, H), jnp.float32),
        "seg_emb":  scale * jax.random.normal(keys[1], (2, H), jnp.float32),
        "pos_emb":  scale * jax.random.normal(keys[2], (S, H), jnp.float32),
        "wq": scale * jax.random.normal(keys[3], (H, H), jnp.float32),
        "bq": scale * jax.random.normal(keys[4], (1, H), jnp.float32),
        "wk": scale * jax.random.normal(keys[5], (H, H), jnp.float32),
        "bk": scale * jax.random.normal(keys[6], (1, H), jnp.float32),
        "wv": scale * jax.random.normal(keys[7], (H, H), jnp.float32),
        "bv": scale * jax.random.normal(keys[8], (1, H), jnp.float32),
        "wo": scale * jax.random.normal(keys[9], (H, H), jnp.float32),
        "bo": scale * jax.random.normal(keys[10], (1, H), jnp.float32),
        "wp": scale * jax.random.normal(keys[11], (H, H), jnp.float32),
        "bp": scale * jax.random.normal(keys[12], (1, H), jnp.float32),
        "wc": scale * jax.random.normal(keys[13], (H, C), jnp.float32),
        "bc": scale * jax.random.normal(keys[14], (1, C), jnp.float32),
    }


if __name__ == "__main__":
    # Small demo sizes chosen so the 2-D grid is actually exercised:
    #   Bt=16, Sk=16 -> grid=(2, 2): 2 parallel batch blocks, 2 online-softmax chunks.
    B, S, H, C, VOCAB = 32, 32, 32, 6, 50

    key = jax.random.PRNGKey(0)
    k_tok, k_seg, k_vl, k_par = jax.random.split(key, 4)

    token_ids = jax.random.randint(k_tok, (B, S), 0, VOCAB, dtype=jnp.int32)
    segment_ids = jax.random.randint(k_seg, (B, S), 0, 2, dtype=jnp.int32)
    valid_length = jax.random.randint(k_vl, (B,), 1, S + 1, dtype=jnp.int32)

    params = _init_params(k_par, VOCAB, S, H, C)
    ref = _reference_forward(token_ids, valid_length, segment_ids, params)

    # f32 compute path: tight check against the f32 reference.
    prepped_f32 = prepare_params(params, compute_dtype=jnp.float32)
    logits_f32 = bert_classifier_forward(token_ids, valid_length, segment_ids,
                                         prepped_f32, block_b=16, block_s=16)
    jax.block_until_ready(logits_f32)
    assert logits_f32.shape == (B, C)
    assert jnp.allclose(logits_f32, ref, atol=1e-3, rtol=1e-3), "f32 mismatch vs reference"

    # bf16 compute path (performance default): f32 accumulation, looser tolerance.
    prepped_bf16 = prepare_params(params)          # default compute_dtype=bf16
    logits_bf16 = bert_classifier_forward(token_ids, valid_length, segment_ids,
                                          prepped_bf16, block_b=16, block_s=16)
    jax.block_until_ready(logits_bf16)
    assert logits_bf16.shape == (B, C)
    assert jnp.allclose(logits_bf16, ref, atol=3e-2, rtol=3e-2), "bf16 mismatch vs reference"

    print("KERNEL_OK")
</pallas_src>

<mosaic_0001>
module attributes {stable_mosaic.version = 11 : i64} {
  func.func @_bert_classifier_kernel(%arg0: i32, %arg1: i32, %arg2: memref<16x1xi32, #tpu.memory_space<vmem>>, %arg3: memref<16x32xf32, #tpu.memory_space<vmem>>, %arg4: memref<16x16x32xf32, #tpu.memory_space<vmem>>, %arg5: memref<32x32xf32, #tpu.memory_space<vmem>>, %arg6: memref<1x32xf32, #tpu.memory_space<vmem>>, %arg7: memref<32x64xf32, #tpu.memory_space<vmem>>, %arg8: memref<1x64xf32, #tpu.memory_space<vmem>>, %arg9: memref<32x32xf32, #tpu.memory_space<vmem>>, %arg10: memref<1x32xf32, #tpu.memory_space<vmem>>, %arg11: memref<32x32xf32, #tpu.memory_space<vmem>>, %arg12: memref<1x32xf32, #tpu.memory_space<vmem>>, %arg13: memref<32x128xf32, #tpu.memory_space<vmem>>, %arg14: memref<1x128xf32, #tpu.memory_space<vmem>>, %arg15: memref<16x128xf32, #tpu.memory_space<vmem>>, %arg16: memref<16x32xf32, #tpu.memory_space<vmem>>, %arg17: memref<16x1xf32, #tpu.memory_space<vmem>>, %arg18: memref<16x1xf32, #tpu.memory_space<vmem>>, %arg19: memref<16x32xf32, #tpu.memory_space<vmem>>) attributes {dimension_semantics = [#tpu.dimension_semantics<parallel>, #tpu.dimension_semantics<arbitrary>], iteration_bounds = array<i64: 2, 2>, scalar_prefetch = 0 : i64, scratch_operands = 4 : i64, tpu.core_type = #tpu.core_type<tc>, window_params = [{transform_indices = @transform_0, window_bounds = array<i64: 16, 1>}, {transform_indices = @transform_1, window_bounds = array<i64: 16, 32>}, {transform_indices = @transform_2, window_bounds = array<i64: 16, 16, 32>}, {pipeline_mode = #tpu.pipeline_mode<synchronous>, transform_indices = @transform_3, window_bounds = array<i64: 32, 32>}, {pipeline_mode = #tpu.pipeline_mode<synchronous>, transform_indices = @transform_4, window_bounds = array<i64: 1, 32>}, {pipeline_mode = #tpu.pipeline_mode<synchronous>, transform_indices = @transform_5, window_bounds = array<i64: 32, 64>}, {pipeline_mode = #tpu.pipeline_mode<synchronous>, transform_indices = @transform_6, window_bounds = array<i64: 1, 64>}, {pipeline_mode = #tpu.pipeline_mode<synchronous>, transform_indices = @transform_7, window_bounds = array<i64: 32, 32>}, {pipeline_mode = #tpu.pipeline_mode<synchronous>, transform_indices = @transform_8, window_bounds = array<i64: 1, 32>}, {pipeline_mode = #tpu.pipeline_mode<synchronous>, transform_indices = @transform_9, window_bounds = array<i64: 32, 32>}, {pipeline_mode = #tpu.pipeline_mode<synchronous>, transform_indices = @transform_10, window_bounds = array<i64: 1, 32>}, {pipeline_mode = #tpu.pipeline_mode<synchronous>, transform_indices = @transform_11, window_bounds = array<i64: 32, 128>}, {pipeline_mode = #tpu.pipeline_mode<synchronous>, transform_indices = @transform_12, window_bounds = array<i64: 1, 128>}, {transform_indices = @transform_13, window_bounds = array<i64: 16, 128>}]} {
    %c0_i32 = arith.constant 0 : i32
    %0 = arith.cmpi eq, %arg1, %c0_i32 : i32
    %1 = arith.extui %0 : i1 to i32
    %c0_i32_0 = arith.constant 0 : i32
    %2 = arith.cmpi ne, %1, %c0_i32_0 : i32
    scf.if %2 {
      %cst_30 = arith.constant 0xFF800000 : f32
      %55 = vector.broadcast %cst_30 : f32 to vector<16x1xf32>
      %c0_31 = arith.constant 0 : index
      %c0_32 = arith.constant 0 : index
      %56 = vector.load %arg17[%c0_31, %c0_32] : memref<16x1xf32, #tpu.memory_space<vmem>>, vector<16x1xf32>
      tpu.vector_store %arg17[%c0_31, %c0_32], %55 {strides = array<i32>} : memref<16x1xf32, #tpu.memory_space<vmem>>, vector<16x1xf32>,
      %cst_33 = arith.constant 0.000000e+00 : f32
      %57 = vector.broadcast %cst_33 : f32 to vector<16x1xf32>
      %c0_34 = arith.constant 0 : index
      %c0_35 = arith.constant 0 : index
      %58 = vector.load %arg18[%c0_34, %c0_35] : memref<16x1xf32, #tpu.memory_space<vmem>>, vector<16x1xf32>
      tpu.vector_store %arg18[%c0_34, %c0_35], %57 {strides = array<i32>} : memref<16x1xf32, #tpu.memory_space<vmem>>, vector<16x1xf32>,
      %cst_36 = arith.constant 0.000000e+00 : f32
      %59 = vector.broadcast %cst_36 : f32 to vector<16x32xf32>
      %c0_37 = arith.constant 0 : index
      %c0_38 = arith.constant 0 : index
      %60 = vector.load %arg19[%c0_37, %c0_38] : memref<16x32xf32, #tpu.memory_space<vmem>>, vector<16x32xf32>
      tpu.vector_store %arg19[%c0_37, %c0_38], %59 {strides = array<i32>} : memref<16x32xf32, #tpu.memory_space<vmem>>, vector<16x32xf32>,
      %c0_39 = arith.constant 0 : index
      %c0_40 = arith.constant 0 : index
      %61 = vector.load %arg3[%c0_39, %c0_40] : memref<16x32xf32, #tpu.memory_space<vmem>>, vector<16x32xf32>
      %c0_41 = arith.constant 0 : index
      %c0_42 = arith.constant 0 : index
      %62 = vector.load %arg5[%c0_41, %c0_42] : memref<32x32xf32, #tpu.memory_space<vmem>>, vector<32x32xf32>
      %cst_43 = arith.constant dense<0.000000e+00> : vector<16x32xf32>
      %63 = tpu.matmul %61, %62, %cst_43 {dimension_numbers = #tpu.dot_dimension_numbers<[1], [0], [0], [1], [0, 0, 1, 1], [], []>} : vector<16x32xf32>, vector<32x32xf32>, vector<16x32xf32> -> vector<16x32xf32>
      %c0_44 = arith.constant 0 : index
      %c0_45 = arith.constant 0 : index
      %64 = vector.load %arg6[%c0_44, %c0_45] : memref<1x32xf32, #tpu.memory_space<vmem>>, vector<1x32xf32>
      %65 = vector.broadcast %64 : vector<1x32xf32> to vector<16x32xf32>
      %66 = arith.addf %63, %65 : vector<16x32xf32>
      %c0_46 = arith.constant 0 : index
      %c0_47 = arith.constant 0 : index
      %67 = vector.load %arg16[%c0_46, %c0_47] : memref<16x32xf32, #tpu.memory_space<vmem>>, vector<16x32xf32>
      tpu.vector_store %arg16[%c0_46, %c0_47], %66 {strides = array<i32>} : memref<16x32xf32, #tpu.memory_space<vmem>>, vector<16x32xf32>,
    } else {
    }
    %c0 = arith.constant 0 : index
    %c0_1 = arith.constant 0 : index
    %c0_2 = arith.constant 0 : index
    %3 = vector.load %arg4[%c0, %c0_1, %c0_2] : memref<16x16x32xf32, #tpu.memory_space<vmem>>, vector<16x16x32xf32>
    %4 = vector.shape_cast %3 : vector<16x16x32xf32> to vector<256x32xf32>
    %c0_3 = arith.constant 0 : index
    %c0_4 = arith.constant 0 : index
    %5 = vector.load %arg7[%c0_3, %c0_4] : memref<32x64xf32, #tpu.memory_space<vmem>>, vector<32x64xf32>
    %cst = arith.constant dense<0.000000e+00> : vector<256x64xf32>
    %6 = tpu.matmul %4, %5, %cst {dimension_numbers = #tpu.dot_dimension_numbers<[1], [0], [0], [1], [0, 0, 1, 1], [], []>} : vector<256x32xf32>, vector<32x64xf32>, vector<256x64xf32> -> vector<256x64xf32>
    %c0_5 = arith.constant 0 : index
    %c0_6 = arith.constant 0 : index
    %7 = vector.load %arg8[%c0_5, %c0_6] : memref<1x64xf32, #tpu.memory_space<vmem>>, vector<1x64xf32>
    %8 = vector.broadcast %7 : vector<1x64xf32> to vector<256x64xf32>
    %9 = arith.addf %6, %8 : vector<256x64xf32>
    %10 = vector.shape_cast %9 : vector<256x64xf32> to vector<16x16x64xf32>
    %11 = vector.extract_strided_slice %10 {offsets = [0, 0, 0], sizes = [16, 16, 32], strides = [1, 1, 1]} : vector<16x16x64xf32> to vector<16x16x32xf32>
    %12 = vector.extract_strided_slice %10 {offsets = [0, 0, 32], sizes = [16, 16, 32], strides = [1, 1, 1]} : vector<16x16x64xf32> to vector<16x16x32xf32>
    %c0_7 = arith.constant 0 : index
    %c0_8 = arith.constant 0 : index
    %13 = vector.load %arg16[%c0_7, %c0_8] : memref<16x32xf32, #tpu.memory_space<vmem>>, vector<16x32xf32>
    %14 = vector.shape_cast %13 : vector<16x32xf32> to vector<16x1x32xf32>
    "tpu.trace_start"() <{level = 10 : i32, message = "bqh,bkh->bqk"}> : () -> ()
    %cst_9 = arith.constant dense<0.000000e+00> : vector<16x1x16xf32>
    %15 = tpu.matmul %14, %11, %cst_9 {dimension_numbers = #tpu.dot_dimension_numbers<[2], [2], [1], [1], [0, 0, 0, 1, 1, 1], [0], [0]>} : vector<16x1x32xf32>, vector<16x16x32xf32>, vector<16x1x16xf32> -> vector<16x1x16xf32>
    "tpu.trace_stop"() : () -> ()
    %16 = vector.shape_cast %15 : vector<16x1x16xf32> to vector<16x16xf32>
    %cst_10 = arith.constant 0.176776692 : f32
    %17 = vector.broadcast %cst_10 : f32 to vector<16x16xf32>
    %18 = arith.mulf %16, %17 : vector<16x16xf32>
    %c16_i32 = arith.constant 16 : i32
    %19 = arith.muli %arg1, %c16_i32 : i32
    %20 = tpu.iota {dimensions = array<i32: 1>} : vector<16x16xi32>
    %21 = vector.broadcast %19 : i32 to vector<16x16xi32>
    %22 = arith.addi %21, %20 : vector<16x16xi32>
    %c0_11 = arith.constant 0 : index
    %c0_12 = arith.constant 0 : index
    %23 = vector.load %arg2[%c0_11, %c0_12] : memref<16x1xi32, #tpu.memory_space<vmem>>, vector<16x1xi32>
    %24 = vector.broadcast %23 : vector<16x1xi32> to vector<16x16xi32>
    %25 = arith.cmpi slt, %22, %24 : vector<16x16xi32>
    %cst_13 = arith.constant -1.000000e+30 : f32
    %26 = vector.broadcast %cst_13 : f32 to vector<16x16xf32>
    %27 = arith.select %25, %18, %26 : vector<16x16xi1>, vector<16x16xf32>
    %c0_14 = arith.constant 0 : index
    %c0_15 = arith.constant 0 : index
    %28 = vector.load %arg17[%c0_14, %c0_15] : memref<16x1xf32, #tpu.memory_space<vmem>>, vector<16x1xf32>
    %cst_16 = arith.constant dense<0xFF800000> : vector<16xf32>
    %29 = vector.multi_reduction <maximumf>, %27, %cst_16 [1] : vector<16x16xf32> to vector<16xf32>
    %30 = vector.shape_cast %29 : vector<16xf32> to vector<16x1xf32>
    %31 = arith.maximumf %28, %30 : vector<16x1xf32>
    %32 = arith.subf %28, %31 : vector<16x1xf32>
    %33 = math.exp %32 : vector<16x1xf32>
    %34 = vector.broadcast %31 : vector<16x1xf32> to vector<16x16xf32>
    %35 = arith.subf %27, %34 : vector<16x16xf32>
    %36 = math.exp %35 : vector<16x16xf32>
    %c0_17 = arith.constant 0 : index
    %c0_18 = arith.constant 0 : index
    %37 = vector.load %arg18[%c0_17, %c0_18] : memref<16x1xf32, #tpu.memory_space<vmem>>, vector<16x1xf32>
    %38 = arith.mulf %33, %37 : vector<16x1xf32>
    %cst_19 = arith.constant dense<0.000000e+00> : vector<16xf32>
    %39 = vector.multi_reduction <add>, %36, %cst_19 [1] : vector<16x16xf32> to vector<16xf32>
    %40 = vector.shape_cast %39 : vector<16xf32> to vector<16x1xf32>
    %41 = arith.addf %38, %40 : vector<16x1xf32>
    %c0_20 = arith.constant 0 : index
    %c0_21 = arith.constant 0 : index
    %42 = vector.load %arg18[%c0_20, %c0_21] : memref<16x1xf32, #tpu.memory_space<vmem>>, vector<16x1xf32>
    tpu.vector_store %arg18[%c0_20, %c0_21], %41 {strides = array<i32>} : memref<16x1xf32, #tpu.memory_space<vmem>>, vector<16x1xf32>,
    %43 = vector.shape_cast %36 : vector<16x16xf32> to vector<16x1x16xf32>
    "tpu.trace_start"() <{level = 10 : i32, message = "bqk,bkh->bqh"}> : () -> ()
    %cst_22 = arith.constant dense<0.000000e+00> : vector<16x1x32xf32>
    %44 = tpu.matmul %43, %12, %cst_22 {dimension_numbers = #tpu.dot_dimension_numbers<[2], [1], [1], [2], [0, 0, 0, 1, 1, 2], [0], [0]>} : vector<16x1x16xf32>, vector<16x16x32xf32>, vector<16x1x32xf32> -> vector<16x1x32xf32>
    "tpu.trace_stop"() : () -> ()
    %45 = vector.shape_cast %44 : vector<16x1x32xf32> to vector<16x32xf32>
    %c0_23 = arith.constant 0 : index
    %c0_24 = arith.constant 0 : index
    %46 = vector.load %arg19[%c0_23, %c0_24] : memref<16x32xf32, #tpu.memory_space<vmem>>, vector<16x32xf32>
    %47 = vector.broadcast %33 : vector<16x1xf32> to vector<16x32xf32>
    %48 = arith.mulf %47, %46 : vector<16x32xf32>
    %49 = arith.addf %48, %45 : vector<16x32xf32>
    %c0_25 = arith.constant 0 : index
    %c0_26 = arith.constant 0 : index
    %50 = vector.load %arg19[%c0_25, %c0_26] : memref<16x32xf32, #tpu.memory_space<vmem>>, vector<16x32xf32>
    tpu.vector_store %arg19[%c0_25, %c0_26], %49 {strides = array<i32>} : memref<16x32xf32, #tpu.memory_space<vmem>>, vector<16x32xf32>,
    %c0_27 = arith.constant 0 : index
    %c0_28 = arith.constant 0 : index
    %51 = vector.load %arg17[%c0_27, %c0_28] : memref<16x1xf32, #tpu.memory_space<vmem>>, vector<16x1xf32>
    tpu.vector_store %arg17[%c0_27, %c0_28], %31 {strides = array<i32>} : memref<16x1xf32, #tpu.memory_space<vmem>>, vector<16x1xf32>,
    %c1_i32 = arith.constant 1 : i32
    %52 = arith.cmpi eq, %arg1, %c1_i32 : i32
    %53 = arith.extui %52 : i1 to i32
    %c0_i32_29 = arith.constant 0 : i32
    %54 = arith.cmpi ne, %53, %c0_i32_29 : i32
    scf.if %54 {
      %c0_30 = arith.constant 0 : index
      %c0_31 = arith.constant 0 : index
      %55 = vector.load %arg19[%c0_30, %c0_31] : memref<16x32xf32, #tpu.memory_space<vmem>>, vector<16x32xf32>
      %c0_32 = arith.constant 0 : index
      %c0_33 = arith.constant 0 : index
      %56 = vector.load %arg18[%c0_32, %c0_33] : memref<16x1xf32, #tpu.memory_space<vmem>>, vector<16x1xf32>
      %57 = tpu.reciprocal %56 {approx = true} : vector<16x1xf32> -> vector<16x1xf32>
      %58 = vector.broadcast %57 : vector<16x1xf32> to vector<16x32xf32>
      %59 = arith.mulf %55, %58 : vector<16x32xf32>
      %c0_34 = arith.constant 0 : index
      %c0_35 = arith.constant 0 : index
      %60 = vector.load %arg9[%c0_34, %c0_35] : memref<32x32xf32, #tpu.memory_space<vmem>>, vector<32x32xf32>
      %cst_36 = arith.constant dense<0.000000e+00> : vector<16x32xf32>
      %61 = tpu.matmul %59, %60, %cst_36 {dimension_numbers = #tpu.dot_dimension_numbers<[1], [0], [0], [1], [0, 0, 1, 1], [], []>} : vector<16x32xf32>, vector<32x32xf32>, vector<16x32xf32> -> vector<16x32xf32>
      %c0_37 = arith.constant 0 : index
      %c0_38 = arith.constant 0 : index
      %62 = vector.load %arg10[%c0_37, %c0_38] : memref<1x32xf32, #tpu.memory_space<vmem>>, vector<1x32xf32>
      %63 = vector.broadcast %62 : vector<1x32xf32> to vector<16x32xf32>
      %64 = arith.addf %61, %63 : vector<16x32xf32>
      %c0_39 = arith.constant 0 : index
      %c0_40 = arith.constant 0 : index
      %65 = vector.load %arg11[%c0_39, %c0_40] : memref<32x32xf32, #tpu.memory_space<vmem>>, vector<32x32xf32>
      %cst_41 = arith.constant dense<0.000000e+00> : vector<16x32xf32>
      %66 = tpu.matmul %64, %65, %cst_41 {dimension_numbers = #tpu.dot_dimension_numbers<[1], [0], [0], [1], [0, 0, 1, 1], [], []>} : vector<16x32xf32>, vector<32x32xf32>, vector<16x32xf32> -> vector<16x32xf32>
      %c0_42 = arith.constant 0 : index
      %c0_43 = arith.constant 0 : index
      %67 = vector.load %arg12[%c0_42, %c0_43] : memref<1x32xf32, #tpu.memory_space<vmem>>, vector<1x32xf32>
      %68 = vector.broadcast %67 : vector<1x32xf32> to vector<16x32xf32>
      %69 = arith.addf %66, %68 : vector<16x32xf32>
      %70 = math.tanh %69 : vector<16x32xf32>
      %c0_44 = arith.constant 0 : index
      %c0_45 = arith.constant 0 : index
      %71 = vector.load %arg13[%c0_44, %c0_45] : memref<32x128xf32, #tpu.memory_space<vmem>>, vector<32x128xf32>
      %cst_46 = arith.constant dense<0.000000e+00> : vector<16x128xf32>
      %72 = tpu.matmul %70, %71, %cst_46 {dimension_numbers = #tpu.dot_dimension_numbers<[1], [0], [0], [1], [0, 0, 1, 1], [], []>} : vector<16x32xf32>, vector<32x128xf32>, vector<16x128xf32> -> vector<16x128xf32>
      %c0_47 = arith.constant 0 : index
      %c0_48 = arith.constant 0 : index
      %73 = vector.load %arg14[%c0_47, %c0_48] : memref<1x128xf32, #tpu.memory_space<vmem>>, vector<1x128xf32>
      %74 = vector.broadcast %73 : vector<1x128xf32> to vector<16x128xf32>
      %75 = arith.addf %72, %74 : vector<16x128xf32>
      %c0_49 = arith.constant 0 : index
      %c0_50 = arith.constant 0 : index
      %76 = vector.load %arg15[%c0_49, %c0_50] : memref<16x128xf32, #tpu.memory_space<vmem>>, vector<16x128xf32>
      tpu.vector_store %arg15[%c0_49, %c0_50], %75 {strides = array<i32>} : memref<16x128xf32, #tpu.memory_space<vmem>>, vector<16x128xf32>,
    } else {
    }
    return
  }
  func.func @transform_0(%arg0: i32, %arg1: i32) -> (i32, i32) {
    %c0_i32 = arith.constant 0 : i32
    %c0_i32_0 = arith.constant 0 : i32
    return %arg0, %c0_i32 : i32, i32
  }
  func.func @transform_1(%arg0: i32, %arg1: i32) -> (i32, i32) {
    %c0_i32 = arith.constant 0 : i32
    %c0_i32_0 = arith.constant 0 : i32
    return %arg0, %c0_i32 : i32, i32
  }
  func.func @transform_2(%arg0: i32, %arg1: i32) -> (i32, i32, i32) {
    %c0_i32 = arith.constant 0 : i32
    %c0_i32_0 = arith.constant 0 : i32
    return %arg0, %arg1, %c0_i32 : i32, i32, i32
  }
  func.func @transform_3(%arg0: i32, %arg1: i32) -> (i32, i32) {
    %c0_i32 = arith.constant 0 : i32
    %c0_i32_0 = arith.constant 0 : i32
    %c0_i32_1 = arith.constant 0 : i32
    return %c0_i32, %c0_i32_0 : i32, i32
  }
  func.func @transform_4(%arg0: i32, %arg1: i32) -> (i32, i32) {
    %c0_i32 = arith.constant 0 : i32
    %c0_i32_0 = arith.constant 0 : i32
    %c0_i32_1 = arith.constant 0 : i32
    return %c0_i32, %c0_i32_0 : i32, i32
  }
  func.func @transform_5(%arg0: i32, %arg1: i32) -> (i32, i32) {
    %c0_i32 = arith.constant 0 : i32
    %c0_i32_0 = arith.constant 0 : i32
    %c0_i32_1 = arith.constant 0 : i32
    return %c0_i32, %c0_i32_0 : i32, i32
  }
  func.func @transform_6(%arg0: i32, %arg1: i32) -> (i32, i32) {
    %c0_i32 = arith.constant 0 : i32
    %c0_i32_0 = arith.constant 0 : i32
    %c0_i32_1 = arith.constant 0 : i32
    return %c0_i32, %c0_i32_0 : i32, i32
  }
  func.func @transform_7(%arg0: i32, %arg1: i32) -> (i32, i32) {
    %c0_i32 = arith.constant 0 : i32
    %c0_i32_0 = arith.constant 0 : i32
    %c0_i32_1 = arith.constant 0 : i32
    return %c0_i32, %c0_i32_0 : i32, i32
  }
  func.func @transform_8(%arg0: i32, %arg1: i32) -> (i32, i32) {
    %c0_i32 = arith.constant 0 : i32
    %c0_i32_0 = arith.constant 0 : i32
    %c0_i32_1 = arith.constant 0 : i32
    return %c0_i32, %c0_i32_0 : i32, i32
  }
  func.func @transform_9(%arg0: i32, %arg1: i32) -> (i32, i32) {
    %c0_i32 = arith.constant 0 : i32
    %c0_i32_0 = arith.constant 0 : i32
    %c0_i32_1 = arith.constant 0 : i32
    return %c0_i32, %c0_i32_0 : i32, i32
  }
  func.func @transform_10(%arg0: i32, %arg1: i32) -> (i32, i32) {
    %c0_i32 = arith.constant 0 : i32
    %c0_i32_0 = arith.constant 0 : i32
    %c0_i32_1 = arith.constant 0 : i32
    return %c0_i32, %c0_i32_0 : i32, i32
  }
  func.func @transform_11(%arg0: i32, %arg1: i32) -> (i32, i32) {
    %c0_i32 = arith.constant 0 : i32
    %c0_i32_0 = arith.constant 0 : i32
    %c0_i32_1 = arith.constant 0 : i32
    return %c0_i32, %c0_i32_0 : i32, i32
  }
  func.func @transform_12(%arg0: i32, %arg1: i32) -> (i32, i32) {
    %c0_i32 = arith.constant 0 : i32
    %c0_i32_0 = arith.constant 0 : i32
    %c0_i32_1 = arith.constant 0 : i32
    return %c0_i32, %c0_i32_0 : i32, i32
  }
  func.func @transform_13(%arg0: i32, %arg1: i32) -> (i32, i32) {
    %c0_i32 = arith.constant 0 : i32
    %c0_i32_0 = arith.constant 0 : i32
    return %arg0, %c0_i32 : i32, i32
  }
}

</mosaic_0001>

<bundles_post_ra>
// kernel: tpu_custom_call.1
= control target key start
LH: loop header
LB: loop body
LE: loop exit
PB: predicated region body
PF: predicated region fallthrough
CT: control target
= control target key end

     0   :  { %s6549_s0 = inlined_call_operand.vmem [shape: s32[32,1], index: 0, kind: input, shape index: {}]   ;;  %s6550_s1 = inlined_call_operand.vmem [shape: f32[32,32], index: 1, kind: input, shape index: {}]   ;;  %s6551_s2 = inlined_call_operand.hbm [shape: f32[32,32,32], index: 2, kind: input, shape index: {}]   ;;  %s6552_s3 = inlined_call_operand.hbm [shape: f32[32,32], index: 3, kind: input, shape index: {}]   ;;  %s6553_s4 = inlined_call_operand.vmem [shape: f32[1,32], index: 4, kind: input, shape index: {}]   ;;  %s6554_s5 = inlined_call_operand.hbm [shape: f32[32,64], index: 5, kind: input, shape index: {}]   ;;  %s6555_s6 = inlined_call_operand.vmem [shape: f32[1,64], index: 6, kind: input, shape index: {}]   ;;  %s6556_s7 = inlined_call_operand.hbm [shape: f32[32,32], index: 7, kind: input, shape index: {}]   ;;  %s6557_s8 = inlined_call_operand.vmem [shape: f32[1,32], index: 8, kind: input, shape index: {}]   ;;  %s6558_s9 = inlined_call_operand.hbm [shape: f32[32,32], index: 9, kind: input, shape index: {}]   ;;  %s6559_s10 = inlined_call_operand.vmem [shape: f32[1,32], index: 10, kind: input, shape index: {}]   ;;  %s6560_s11 = inlined_call_operand.hbm [shape: f32[32,128], index: 11, kind: input, shape index: {}]   ;;  %s6561_s12 = inlined_call_operand.vmem [shape: f32[1,128], index: 12, kind: input, shape index: {}]   ;;  %s6562_s13 = inlined_call_operand.hbm [shape: f32[32,128], index: 13, kind: output, shape index: {}]  }
   0x1   :  { %6573 = sst [smem:[#allocation34_spill]] %s6550_s1 }
   0x2   :  { %6574 = sst [smem:[#allocation35_spill]] %s6552_s3 }
   0x3   :  { %6575 = sst [smem:[#allocation36_spill]] %s6553_s4 }
   0x4   :  { %6576 = sst [smem:[#allocation37_spill]] %s6554_s5 }
   0x5   :  { %6577 = sst [smem:[#allocation38_spill]] %s6555_s6 }
   0x6   :  { %6578 = sst [smem:[#allocation39_spill]] %s6557_s8 }
   0x7   :  { %6579 = sst [smem:[#allocation40_spill]] %s6559_s10 }
   0x8   :  { %6580 = sst [smem:[#allocation41_spill]] %s6561_s12 }
   0x9   :  { %6581 = sst [smem:[#allocation42_spill]] %s6562_s13 }
   0xa   :  { %18 = vsyncpa [#allocation7], 0 }
   0xb   :  { %20 = vsyncpa [#allocation7 + $0x1], 0 }
   0xc   :  { %21 = vsyncpa [#allocation10], 0 }
   0xd   :  { %22 = vsyncpa [#allocation13], 0 }
   0xe   :  { %23 = vsyncpa [#allocation16], 0 }
   0xf   :  { %24 = vsyncpa [#allocation8], 0 }
  0x10   :  { %26 = vsyncpa [#allocation8 + $0x1], 0  ;;  %s5646_s25 = smov 0   ;;  %s5648_s26 = smov 0  }
  0x11   :  { %s5650_s27 = smov 0   ;;  %s5652_s28 = smov 0  }
  0x12   :  { %s5654_s29 = smov 0   ;;  %s5656_s30 = smov 0  }
  0x13   :  { %s5658_s14 = smov 0   ;;  %s5660_s15 = smov 0  }
  0x14   :  { %s5662_s16 = smov 0   ;;  %s5664_s17 = smov 0  }
  0x15   :  { %s5666_s18 = smov 0  }
  0x16 LB: > { %6582 = sst [smem:[#allocation26_spill]] %s5510_s25  ;;  %s4467_s19 = sadd.s32 4294967295, %s5550_s18   ;;  %s5550_s18 = sphi %s5666_s18, %s32_s18   ;;  %s5546_s17 = sphi %s5664_s17, %s6627_s17   ;;  %s5542_s16 = sphi %s5662_s16, %s6626_s16   ;;  %s5538_s15 = sphi %s5660_s15, %s6625_s15   ;;  %s5534_s14 = sphi %s5658_s14, %s6624_s14   ;;  %s5530_s30 = sphi %s5656_s30, %s6623_s30   ;;  %s5526_s29 = sphi %s5654_s29, %s6622_s29   ;;  %s5522_s28 = sphi %s5652_s28, %s6621_s28   ;;  %s5518_s27 = sphi %s5650_s27, %s6615_s27   ;;  %s5514_s26 = sphi %s5648_s26, %s6620_s26   ;;  %s5510_s25 = sphi %s5646_s25, %s6619_s25  }
  0x17   : > { %6583 = sst [smem:[#allocation27_spill]] %s5518_s27  ;;  %s4468_s20 = sadd.s32 4294967294, %s5550_s18  }
  0x18   : > { %6584 = sst [smem:[#allocation28_spill]] %s5534_s14  ;;  %s41_s21 = sadd.s32 1, %s5542_s16 }
  0x19   : > { %s44_s22 = sadd.s32 1, %s5546_s17  ;;  %p42_p0 = scmp.ge.s32.totalorder %s41_s21, 2 }
  0x1a   : > { %s105_s23 = sadd.s32 1, %s5530_s30  ;;  %p112_p1 = scmp.ne.s32.totalorder %s5530_s30, %s5526_s29 }
  0x1b   : > { %p113_p2 = scmp.eq.s32.totalorder %s5550_s18, 0  ;;  %s6629_s21 = smov (%p42_p0, %s41_s21), 0 }
  0x1c   : > { %6585 = sst [smem:[#allocation29_spill]] %s6629_s21  ;;  %s6631_s22 = smov (!%p42_p0, %s44_s22), %s5546_s17 }
  0x1d   : > { %s101_s24 = ssub.s32 %s5542_s16, %s6629_s21  ;;  %p5712_p3 = por %p113_p2, %p112_p1 }
  0x1e   : > { %p46_p4 = scmp.ge.s32.totalorder %s6631_s22, 2  ;;  %p118_p5 = scmp.ne.s32.totalorder %s5526_s29, %s5522_s28 }
  0x1f   : > { %p5717_p6 = scmp.eq.s32.totalorder %s4467_s19, 0  ;;  %s341_s10 = sadd.s32 1, %s5518_s27 }
  0x20   : > { %s6633_s22 = smov (%p46_p4, %s6631_s22), 0  ;;  %p351_p8 = scmp.ne.s32.totalorder %s5518_s27, %s5514_s26 }
  0x21   : > { %s6587_s12 = scalar_select %p5717_p6, 1, 0 }
  0x22   : > { %6588 = sst [smem:[#allocation30_spill]] %s6633_s22  ;;  %p5726_p7 = por %p5717_p6, %p118_p5 }
  0x23   : > { %s100_s8 = ssub.s32 %s5546_s17, %s6633_s22  ;;  %p352_p9 = scmp.eq.s32.totalorder %s4467_s19, 3 }
  0x24   : > { %s102_s28 = sor.u32 %s101_s24, %s100_s8  ;;  %p339_p10 = scmp.eq.s32.totalorder %s100_s8, 0 }
  0x25   : > { %p103_p11 = scmp.eq.s32.totalorder %s102_s28, 0  ;;  %p5734_p12 = por %p352_p9, %p351_p8 }
  0x26   : > { %s5739_s4 = scalar_select %p339_p10, %s5518_s27, %s341_s10  }
  0x27   : > { %s6590_s6 = scalar_select %p5734_p12, 1, 0 }
  0x28   : > { %6591 = sst [smem:[#allocation31_spill]] %s5739_s4  ;;  %p357_p13 = scmp.ne.s32.totalorder %s5514_s26, %s5510_s25 }
  0x29   : > { %s5742_s14 = scalar_select %p103_p11, %s5530_s30, %s105_s23  }
  0x2a   : > { %p358_p0 = scmp.eq.s32.totalorder %s4468_s20, 3  ;;  %p4469_p1 = scmp.ge.s32.totalorder %s5550_s18, 1 }
  0x2b   : > { %6592 = sst [smem:[#allocation32_spill]] %s5742_s14  ;;  %p365_p2 = scmp.lt.s32.totalorder %s5550_s18, 5 }
  0x2c   : > { %p5748_p4 = por %p358_p0, %p357_p13  ;;  %s5552_s8 = smov [#allocation9]  }
  0x2d   : > { %p5752_p5 = pnand %p4469_p1, %p365_p2  ;;  %s377_s24 = sshll.u32 %s5552_s8, 4  ;;  %s378_s24 = int_to_ptr.vmem [resolvable:$true] %s377_s24 }
  0x2e   : > { %s6593_s1 = scalar_select %p5748_p4, 1, 0 }
  0x2f   : > { %p5125_p8 = pneg %p5752_p5  ;;  %s5553_s20 = smov [#allocation12]  }
  0x30   : > { %6594 = sst [smem:[#allocation33_spill]] %s6593_s1  ;;  %s409_s23 = sshll.u32 %s5553_s20, 4  ;;  %s410_s23 = int_to_ptr.vmem [resolvable:$true] %s409_s23 }
  0x31   : > { %p5760_p9 = pnand %p5125_p8, %p5717_p6  ;;  %s5554_s28 = smov [#allocation11]  }
  0x32   : > { %s393_s22 = sshll.u32 %s5554_s28, 4  ;;  %s5299_s8 = scalar_lea.vmem %s378_s24, 512  ;;  %s394_s22 = int_to_ptr.vmem [resolvable:$true] %s393_s22 }
  0x33   : > { %p5766_p10 = pneg %p5760_p9  ;;  %p5300_p11 = scmp.ne.s32.totalorder %s378_s24, %s5299_s8 }
  0x34   : > { %p5307_p1 = scmp.lt.s32.totalorder %s378_s24, %s378_s24  ;;  %p5308_p2 = scmp.lt.s32.totalorder %s5299_s8, %s5299_s8 }
  0x35   : > { %p5302_p13 = pnand %p5300_p11, %p5766_p10 }
  0x36   : > { %p5309_p8 = por %p5308_p2, %p5307_p1 }
  0x37   : > { %p5303_p0 = pneg %p5302_p13 }
  0x39   : > { %p5310_p4 = pnand %p5309_p8, %p5303_p0 }
  0x3b   : > { %5313 = shalt.err (!%p5310_p4)
}
  0x3c   : > { %s5555_s20 = smov 128   ;;  %s5556_s28 = smov 8  }
  0x3d   : > { %s6598_s3 = sld [smem:[#allocation35_spill]]  ;;  %s5325_s1 = scalar_lea.vmem %s410_s23, 512 }
  0x3e   : > { %p5326_p11 = scmp.ne.s32.totalorder %s410_s23, %s5325_s1  ;;  %p5333_p1 = scmp.lt.s32.totalorder %s410_s23, %s410_s23 }
  0x3f   : > { %p5334_p0 = scmp.lt.s32.totalorder %s5325_s1, %s5325_s1 }
  0x40   : > { %p5328_p13 = pnand %p5326_p11, %p5766_p10 }
  0x41   : > { %p5335_p4 = por %p5334_p0, %p5333_p1 }
  0x42   : > { %p5329_p12 = pneg %p5328_p13 }
  0x43   : > { %5128 = dma.hbm_to_vmem [thread:$0]  (!%p5760_p9), %s6598_s3, 512, %s378_s24, [#allocation10], %s5555_s20, %s5555_s20, %s5556_s28  }
  0x44   : > { %p5336_p2 = pnand %p5335_p4, %p5329_p12 }
  0x46   : > { %5339 = shalt.err (!%p5336_p2)
}
  0x47   : > { %5134 = dma.hbm_to_vmem [thread:$0]  (!%p5760_p9), %s6556_s7, 512, %s410_s23, [#allocation13], %s5555_s20, %s5555_s20, %s5556_s28  }
  0x48   : > { %s5351_s4 = scalar_lea.vmem %s394_s22, 512  ;;  %p5359_p6 = scmp.lt.s32.totalorder %s394_s22, %s394_s22 }
  0x49   : > { %p5352_p8 = scmp.ne.s32.totalorder %s394_s22, %s5351_s4  ;;  %p5360_p1 = scmp.lt.s32.totalorder %s5351_s4, %s5351_s4 }
  0x4b   : > { %p5354_p11 = pnand %p5352_p8, %p5766_p10  ;;  %p5361_p12 = por %p5360_p1, %p5359_p6 }
  0x4d   : > { %p5355_p13 = pneg %p5354_p11 }
  0x4f   : > { %p5362_p0 = pnand %p5361_p12, %p5355_p13 }
  0x51   : > { %5365 = shalt.err (!%p5362_p0)
}
  0x52   : > { %s6599_s5 = sld [smem:[#allocation37_spill]]  ;;  %s5557_s27 = smov [#allocation14]  }
  0x53   : > { %s425_s24 = sshll.u32 %s5557_s27, 4  ;;  %s5558_s23 = smov [#allocation15]   ;;  %s426_s24 = int_to_ptr.vmem [resolvable:$true] %s425_s24 }
  0x54   : > { %s441_s8 = sshll.u32 %s5558_s23, 4  ;;  %s5377_s3 = scalar_lea.vmem %s426_s24, 512  ;;  %s442_s8 = int_to_ptr.vmem [resolvable:$true] %s441_s8 }
  0x55   : > { %p5378_p4 = scmp.ne.s32.totalorder %s426_s24, %s5377_s3  ;;  %p5385_p8 = scmp.lt.s32.totalorder %s426_s24, %s426_s24 }
  0x56   : > { %p5386_p11 = scmp.lt.s32.totalorder %s5377_s3, %s5377_s3 }
  0x57   : > { %p5380_p6 = pnand %p5378_p4, %p5766_p10 }
  0x58   : > { %5131 = dma.hbm_to_vmem [thread:$0]  (!%p5760_p9), %s6599_s5, 512, %s394_s22, [#allocation10], %s5555_s20, %s5555_s20, %s5556_s28  }
  0x59   : > { %p5381_p2 = pneg %p5380_p6  ;;  %p5387_p13 = por %p5386_p11, %p5385_p8 }
  0x5b   : > { %p5388_p1 = pnand %p5387_p13, %p5381_p2 }
  0x5d   : > { %5391 = shalt.err (!%p5388_p1)
}
  0x5e   : > { %5137 = dma.hbm_to_vmem [thread:$0]  (!%p5760_p9), %s6558_s9, 512, %s426_s24, [#allocation13], %s5555_s20, %s5555_s20, %s5556_s28  }
  0x5f   : > { %s5403_s1 = scalar_lea.vmem %s442_s8, 512  ;;  %p5411_p6 = scmp.lt.s32.totalorder %s442_s8, %s442_s8 }
  0x60   : > { %p5404_p12 = scmp.ne.s32.totalorder %s442_s8, %s5403_s1  ;;  %p5412_p8 = scmp.lt.s32.totalorder %s5403_s1, %s5403_s1 }
  0x62   : > { %p5406_p0 = pnand %p5404_p12, %p5766_p10  ;;  %p5413_p2 = por %p5412_p8, %p5411_p6 }
  0x64   : > { %p5407_p4 = pneg %p5406_p0 }
  0x66   : > { %p5414_p11 = pnand %p5413_p2, %p5407_p4 }
  0x68   : > { %5417 = shalt.err (!%p5414_p11)
}
  0x69   : > { %5140 = dma.hbm_to_vmem [thread:$0]  (!%p5760_p9), %s6560_s11, 512, %s442_s8, [#allocation16], %s5555_s20, %s5555_s20, %s5556_s28  }
  0x6a   : > { %p4475_p13 = scmp.ge.s32.totalorder %s5550_s18, 4 }
  0x6c   : > { %454 = sbr.rel (%p4475_p13) target bundleno = 129 (0x81), region = 56 }
  0x71   : > { %s476_s14 = sand.u32 1, %s5530_s30   ;;  %s4478_s27 = sshll.u32 %s5542_s16, 1 }
  0x72   : > { %s4476_s10 = sshll.u32 %s476_s14, 8  ;;  %s4612_s24 = sshll.u32 %s5546_s17, 6 }
  0x73   : > { %s487_s23 = sadd.s32 %s4612_s24, %s4478_s27  ;;  %s480_s22 = scalar_lea.vmem [#allocation6], %s4476_s10 }
  0x74   : > { %s502_s4 = sshll.u32 %s480_s22, 4  ;;  %s4480_s20 = sshll.u32 %s487_s23, 7  ;;  %s503_s4 = int_to_ptr.vmem [resolvable:$true] %s502_s4 }
  0x75   : > { %s5104_s28 = scalar_select %p5712_p3, [#allocation0], [#allocation20] }
  0x76   : > { %s5559_s8 = smov 512   ;;  %s5560_s3 = smov 256  }
  0x77   : > { %5105 = sst [smem:[#allocation19]] (%p5712_p3), %s5559_s8  ;;  %s5561_s25 = smov 2  }
  0x78   : > { %s494_s1 = sld [smem:[%s5104_s28]]   ;;  %s5562_s27 = smov 128  }
  0x79   : > { %5106 = sst [smem:[#allocation19 + $0x1]] (%p5712_p3), %s5560_s3  ;;  %s489_s23 = scalar_lea.hbm %s6551_s2, %s4480_s20 }
  0x7a   : > { %5107 = sst [smem:[#allocation19 + $0x2]] (%p5712_p3), %s5561_s25  ;;  %s5563_s22 = smov 8  }
  0x7b   : > { %5108 = sst [smem:[#allocation19 + $0x3]] (%p5712_p3), %s5562_s27  ;;  %s477_s5 = scalar_lea.sflag [#allocation7], %s476_s14 }
  0x7c   : > { %5109 = sst [smem:[#allocation19 + $0x4]] (%p5712_p3), %s5562_s27  ;;  %s5564_s3 = smov 131072  }
  0x7d   : > { %5110 = sst [smem:[#allocation19 + $0x5]] (%p5712_p3), %s5563_s22 }
  0x7e   : > { %s4481_s28 = sshll.u32 %s494_s1, 26 }
  0x7f   : > { %s4482_s8 = sadd.s32 134217728, %s4481_s28 }
  0x80   : > { %5111 = dma.general (%p5712_p3), %s489_s23, 4096, %s503_s4, %s477_s5, %s5564_s3, [#allocation19], %s4482_s8, 0  }
  0x81 PF: > { %527 = sbr.rel (%p5752_p5) target bundleno = 2148 (0x864), region = 72  ;;  %s529_s25 = sand.u32 (!%p5752_p5), 1, %s5526_s29  }
  0x82   : > { %s4484_s10 = sshll.u32 (!%p5752_p5), %s529_s25, 8  ;;  %s530_s20 = scalar_lea.sflag (!%p5752_p5), [#allocation7], %s529_s25 }
  0x83   : > { %s5846_s24 = scalar_lea.vmem (!%p5752_p5), [#allocation6], %s4484_s10 }
  0x86   : > { %5489 = dma.done.wait (%p5726_p7), %s530_s20, 4096  }
  0x87   : > { %5491 = vsyncadd (%p5726_p7), %s530_s20, 4294963200  ;;  %p6600_p9 = scmp.ne.s32.totalorder %s6587_s12, 0 }
  0x89   : > { %5493 = dma.done.wait (%p6600_p9), [#allocation10], 1024  }
  0x8a   : > { %5495 = vsyncadd (%p6600_p9), [#allocation10], 4294966272 }
  0x8b   : > { %5497 = dma.done.wait (%p6600_p9), [#allocation13], 1024  }
  0x8c   : > { %5499 = vsyncadd (%p6600_p9), [#allocation13], 4294966272 }
  0x8d   : > { %5501 = dma.done.wait (%p6600_p9), [#allocation16], 512  }
  0x8e   : > { %5503 = vsyncadd (%p6600_p9), [#allocation16], 4294966784  ;;  %s603_s5 = sand.u32 1, %s5514_s26   ;;  %s4491_s13 = sshll.u32 %s5538_s15, 1 }
  0x8f   : > { %s4490_s21 = sshll.u32 %s603_s5, 4  ;;  %p607_p3 = scmp.lt.s32.totalorder %s4491_s13, 3 }
  0x90   : > { %s6601_s22 = sld [smem:[#allocation34_spill]]  ;;  %s5876_s28 = scalar_lea.vmem [#allocation17], %s4490_s21 }
  0x91   : > { %s6635_s13 = smov (!%p607_p3, %s4491_s13), 3  ;;  %s6602_s8 = sld [smem:[#allocation28_spill]] }
  0x92   : > { %s4492_s19 = sshll.u32 %s6635_s13, 3 }
  0x93   : > { %s5871_s1 = scalar_lea.vmem %s6549_s0, %s4492_s19 }
  0x96   : > { %s616_s12 = scalar_lea.vmem %s6601_s22, %s4492_s19 }
  0x97   : > { %p4495_p7 = scmp.ne.s32.totalorder %s6602_s8, 0 }
  0x98   : > { %s6603_s10 = sld [smem:[#allocation36_spill]] (!%p4495_p7) }
  0x99   : > { %624 = sbr.rel (%p4495_p7) target bundleno = 365 (0x16d), region = 100 }
  0x9e   : > { %v638_v0 = vld [vmem:[#allocation9 + $0x18] sm:$0xff]  ;;  %v637_v1 = vld [vmem:[#allocation9 + $0x10] sm:$0xff]  ;;  %vm625_vm0 = vcmask 7168   ;;  %v5565_v2 = vmov -inf   ;;  %v5566_v3 = vmov 0.0   ;;  %vm630_vm1 = vcmask 261120  }
  0x9f   : > { %4770 = vmatprep.subr.mxu0 %v638_v0  ;;  %626 = vst.msk [vmem:[#allocation3] sm:$0xff] %vm625_vm0, %v5565_v2  ;;  %627 = vst.msk [vmem:[#allocation3 + $0x8] sm:$0xff] %vm625_vm0, %v5565_v2  ;;  %v633_v4 = vld [vmem:[%s616_s12] sm:$0xff]  ;;  %v636_v5 = vld [vmem:[#allocation9 + $0x8] sm:$0xff] }
  0xa0   : > { %628 = vst.msk [vmem:[#allocation4] sm:$0xff] %vm625_vm0, %v5566_v3  ;;  %629 = vst.msk [vmem:[#allocation4 + $0x8] sm:$0xff] %vm625_vm0, %v5566_v3  ;;  %4771 = vmatpush3.msra.mxu0 %v638_v0  ;;  %4778 = vmatprep.mubr.msk.f32.mxu0 %vm630_vm1, %v633_v4  ;;  %v635_v6 = vld [vmem:[#allocation9] sm:$0xff]  ;;  %v634_v7 = vld [vmem:[%s616_s12 + $0x8] sm:$0xff] }
  0xa1   : > { %631 = vst.msk [vmem:[#allocation5] sm:$0xff] %vm630_vm1, %v5566_v3  ;;  %632 = vst.msk [vmem:[#allocation5 + $0x8] sm:$0xff] %vm630_vm1, %v5566_v3  ;;  %4772 = vmatprep.subr.mxu0 %v637_v1  ;;  %v4496_v8 = vld [vmem:[%s6603_s10] ss:$0 sm:$0xff] }
  0xa2   : > { %4773 = vmatpush3.msra.mxu0 %v637_v1 }
  0xa3   : > { %4774 = vmatprep.subr.mxu0 %v636_v5 }
  0xa4   : > { %4775 = vmatpush3.msra.mxu0 %v636_v5 }
  0xa5   : > { %4776 = vmatprep.subr.mxu0 %v635_v6 }
  0xa6   : > { %4777 = vmatpush3.msra.mxu0 %v635_v6 }
  0xa7   : > { %4779 = vmatmul.mubr.msk.f32.vlgmr.msra.gmra.mxu0 %vm630_vm1, %v634_v7 }
 0x167   : > { %v4780_v9 = vpop.f32.mrf.mxu0 }
 0x168   : > { %v724_v10 = vadd.f32 %v4780_v9, %v4496_v8 }
 0x169   : > { %v718_v11 = vpop.f32.mrf.mxu0 }
 0x16a   : > { %728 = vst.msk [vmem:[#allocation2 + $0x8] sm:$0xff] %vm630_vm1, %v724_v10  ;;  %v719_v12 = vadd.f32 %v4496_v8, %v718_v11 }
 0x16c   : > { %727 = vst.msk [vmem:[#allocation2] sm:$0xff] %vm630_vm1, %v719_v12 }
 0x16d PF: > { %v764_v13 = vld [vmem:[#allocation11 + $0x18] sm:$0xff]  ;;  %v763_v14 = vld [vmem:[#allocation11 + $0x10] sm:$0xff]  ;;  %vm772_vm2 = vcmask 261120   ;;  %v729_v15 = vld [vmem:[%s5846_s24] sm:$0xff]  ;;  %v5567_v16 = vmov 0   ;;  %v5568_v52 = vmov 0.0   ;;  %v1102_v55 = vlaneseq }
 0x16e   : > { %4781 = vmatprep.subr.mxu0 %v764_v13  ;;  %5267 = vset.pattern.permute.xlu0 %v5567_v16  ;;  %v762_v17 = vld [vmem:[#allocation11 + $0x8] sm:$0xff]  ;;  %v761_v18 = vld [vmem:[#allocation11] sm:$0xff]  ;;  %v731_v20 = vld [vmem:[%s5846_s24 + $0x10] sm:$0xff]  ;;  %vm5569_vm3 = vmmov 0   ;;  %v5570_v53 = vmov 1966171168  }
 0x16f   : > { %4782 = vmatpush3.msra.mxu0 %v764_v13  ;;  %4789 = vmatprep.mubr.msk.f32.mxu0 %vm772_vm2, %v729_v15  ;;  %v730_v19 = vld [vmem:[%s5846_s24 + $0x8] sm:$0xff]  ;;  %v732_v21 = vld [vmem:[%s5846_s24 + $0x18] sm:$0xff]  ;;  %v733_v22 = vld [vmem:[%s5846_s24 + $0x20] sm:$0xff]  ;;  %v1100_v54 = vunpack.c.l.s4 %v5570_v53  ;;  %v1103_v57 = vshrl.u32 %v1102_v55, 7  ;;  %s6604_s13 = sld [smem:[#allocation38_spill]]  ;;  %s5571_s21 = smov 96  }
 0x170   : > { %4783 = vmatprep.subr.mxu0 %v763_v14  ;;  %5268 = vset.pattern.permute.xlu1 %v5567_v16  ;;  %v2465_v23 = vld [vmem:[%s5871_s1] sm:$0xff]  ;;  %v734_v24 = vld [vmem:[%s5846_s24 + $0x28] sm:$0xff]  ;;  %v735_v26 = vld [vmem:[%s5846_s24 + $0x30] sm:$0xff]  ;;  %s6605_s19 = sld [smem:[#allocation28_spill]]  ;;  %vm2492_vm4 = vcmask 1041409   ;;  %vm2495_vm5 = vcmask 1042434  }
 0x171   : > { %4784 = vmatpush3.msra.mxu0 %v763_v14  ;;  %2468 = vperm.xlu0 %5267, %v2465_v23   ;;  %v2466_v25 = vld [vmem:[%s5871_s1 + $0x8] sm:$0xff]  ;;  %v736_v27 = vld [vmem:[%s5846_s24 + $0x38] sm:$0xff]  ;;  %v737_v28 = vld [vmem:[%s5846_s24 + $0x40] sm:$0xff]  ;;  %v1101_v56 = vunpack.c.0.s8 %v1100_v54  ;;  %vm2498_vm6 = vcmask 1043459   ;;  %vm2501_vm7 = vcmask 1044484   ;;  %vm2504_vm8 = vcmask 1045509  }
 0x172   : > { %4785 = vmatprep.subr.mxu0 %v762_v17  ;;  %v738_v29 = vld [vmem:[%s5846_s24 + $0x48] sm:$0xff]  ;;  %v739_v30 = vld [vmem:[%s5846_s24 + $0x50] sm:$0xff]  ;;  %v740_v31 = vld [vmem:[%s5846_s24 + $0x58] sm:$0xff]  ;;  %4837 = vmatprep.subr.mxu1 %v5568_v52  ;;  %vm2507_vm9 = vcmask 1046534   ;;  %vm2510_vm10 = vcmask 1047559   ;;  %vm2532_vm12 = vcmask 130048  }
 0x173   : > { %4786 = vmatpush3.msra.mxu0 %v762_v17  ;;  %v741_v32 = vld [vmem:[%s5846_s24 + $0x60] sm:$0xff]  ;;  %v742_v33 = vld [vmem:[%s5846_s24 + $0x68] sm:$0xff]  ;;  %v743_v34 = vld [vmem:[%s5846_s24 + $0x70] sm:$0xff]  ;;  %4841 = vmatprep.mubr.msk.f32.mxu1 %vm5569_vm3, %v5568_v52  ;;  %v5966_v59 = vsub.s32 %v1101_v56, %v1103_v57  ;;  %vm2575_vm14 = vcmask 7168  }
 0x174   : > { %4787 = vmatprep.subr.mxu0 %v761_v18  ;;  %v744_v35 = vld [vmem:[%s5846_s24 + $0x78] sm:$0xff]  ;;  %v745_v36 = vld [vmem:[%s5846_s24 + $0x80] sm:$0xff]  ;;  %v746_v37 = vld [vmem:[%s5846_s24 + $0x88] sm:$0xff] }
 0x175   : > { %4788 = vmatpush3.msra.mxu0 %v761_v18  ;;  %2471 = vperm.xlu0 %5267, %v2466_v25   ;;  %v747_v38 = vld [vmem:[%s5846_s24 + $0x90] sm:$0xff]  ;;  %v748_v39 = vld [vmem:[%s5846_s24 + $0x98] sm:$0xff]  ;;  %v749_v40 = vld [vmem:[%s5846_s24 + $0xa0] sm:$0xff] }
 0x176   : > { %4790 = vmatmul.mubr.msk.f32.vlgmr.msra.gmra.mxu0 %vm772_vm2, %v730_v19  ;;  %v750_v41 = vld [vmem:[%s5846_s24 + $0xa8] sm:$0xff]  ;;  %v751_v42 = vld [vmem:[%s5846_s24 + $0xb0] sm:$0xff]  ;;  %v752_v43 = vld [vmem:[%s5846_s24 + $0xb8] sm:$0xff]  ;;  %4893 = vmatprep.subr.mxu0 %v5568_v52  ;;  %s4580_s14 = sshll.u32 %s6605_s19, 4  ;;  %p4597_p5 = scmp.ne.s32.totalorder %s6605_s19, 1 }
 0x177   : > { %4792 = vmatprep.mubr.msk.f32.mxu0 %vm772_vm2, %v731_v20  ;;  %v753_v44 = vld [vmem:[%s5846_s24 + $0xc0] sm:$0xff]  ;;  %v754_v45 = vld [vmem:[%s5846_s24 + $0xc8] sm:$0xff]  ;;  %v755_v46 = vld [vmem:[%s5846_s24 + $0xd0] sm:$0xff]  ;;  %s6606_s27 = sld [smem:[#allocation39_spill]] (!%p4597_p5) }
 0x178   : > { %v756_v47 = vld [vmem:[%s5846_s24 + $0xd8] sm:$0xff]  ;;  %v757_v48 = vld [vmem:[%s5846_s24 + $0xe0] sm:$0xff]  ;;  %v758_v49 = vld [vmem:[%s5846_s24 + $0xe8] sm:$0xff]  ;;  %s6607_s12 = sld [smem:[#allocation40_spill]] (!%p4597_p5) }
 0x179   : > { %v759_v50 = vld [vmem:[%s5846_s24 + $0xf0] sm:$0xff]  ;;  %v760_v51 = vld [vmem:[%s5846_s24 + $0xf8] sm:$0xff]  ;;  %v5964_v58 = vld [vmem:[%s6604_s13] ss:$0 sm:$0xff]  ;;  %s6608_s25 = sld [smem:[#allocation41_spill]] (!%p4597_p5) }
 0x17a   : > { %4793 = vmatmul.mubr.msk.f32.gmra.mxu0 %vm772_vm2, %v732_v21  ;;  %v5968_v60 = vld [vmem:[#allocation2] sm:$0xff] }
 0x17b   : > { %4795 = vmatprep.mubr.msk.f32.mxu0 %vm772_vm2, %v733_v22  ;;  %v1105_v0 = vrot.slane %v5968_v60, %v5966_v59  ;;  %v1098_v25 = vcombine.high %v5968_v60, %v5968_v60 }
 0x17d   : > { %v1121_v5 = vrot.slane %v1105_v0, %v5966_v59  ;;  %v1113_v8 = vcombine.high %v1105_v0, %v1105_v0 }
 0x17e   : > { %4796 = vmatmul.mubr.msk.f32.gmra.mxu0 %vm772_vm2, %v734_v24 }
 0x17f   : > { %4798 = vmatprep.mubr.msk.f32.mxu0 %vm772_vm2, %v735_v26  ;;  %v1135_v12 = vrot.slane %v1113_v8, %v5966_v59  ;;  %v1143_v18 = vcombine.high %v1121_v5, %v1121_v5 }
 0x182   : > { %4799 = vmatmul.mubr.msk.f32.gmra.mxu0 %vm772_vm2, %v736_v27  ;;  %v1145_v27 = vcombine.high %v1135_v12, %v1135_v12 }
 0x183   : > { %4801 = vmatprep.mubr.msk.f32.mxu0 %vm772_vm2, %v737_v28 }
 0x186   : > { %4802 = vmatmul.mubr.msk.f32.gmra.mxu0 %vm772_vm2, %v738_v29  ;;  %v1095_v29 = vld [vmem:[#allocation2 + $0x8] sm:$0xff] }
 0x187   : > { %4804 = vmatprep.mubr.msk.f32.mxu0 %vm772_vm2, %v739_v30  ;;  %v1147_v56 = vcombine.high %v1095_v29, %v1095_v29 }
 0x18a   : > { %4805 = vmatmul.mubr.msk.f32.gmra.mxu0 %vm772_vm2, %v740_v31 }
 0x18b   : > { %4807 = vmatprep.mubr.msk.f32.mxu0 %vm772_vm2, %v741_v32  ;;  %v1112_v32 = vrot.slane %v1098_v25, %v5966_v59 }
 0x18e   : > { %4808 = vmatmul.mubr.msk.f32.gmra.mxu0 %vm772_vm2, %v742_v33 }
 0x18f   : > { %4810 = vmatprep.mubr.msk.f32.mxu0 %vm772_vm2, %v743_v34  ;;  %v6040_v34 = vrot.slane %v1095_v29, %v5966_v59 }
 0x192   : > { %4811 = vmatmul.mubr.msk.f32.gmra.mxu0 %vm772_vm2, %v744_v35 }
 0x193   : > { %4813 = vmatprep.mubr.msk.f32.mxu0 %vm772_vm2, %v745_v36 }
 0x196   : > { %4814 = vmatmul.mubr.msk.f32.gmra.mxu0 %vm772_vm2, %v746_v37 }
 0x197   : > { %4816 = vmatprep.mubr.msk.f32.mxu0 %vm772_vm2, %v747_v38  ;;  %v1128_v38 = vrot.slane %v1112_v32, %v5966_v59 }
 0x19a   : > { %4817 = vmatmul.mubr.msk.f32.gmra.mxu0 %vm772_vm2, %v748_v39 }
 0x19b   : > { %4819 = vmatprep.mubr.msk.f32.mxu0 %vm772_vm2, %v749_v40  ;;  %v1170_v40 = vrot.slane %v6040_v34, %v5966_v59 }
 0x19d   : > { %v1192_v54 = vcombine.high %v1170_v40, %v1170_v40 }
 0x19e   : > { %4820 = vmatmul.mubr.msk.f32.gmra.mxu0 %vm772_vm2, %v750_v41 }
 0x19f   : > { %4822 = vmatprep.mubr.msk.f32.mxu0 %vm772_vm2, %v751_v42 }
 0x1a2   : > { %4823 = vmatmul.mubr.msk.f32.gmra.mxu0 %vm772_vm2, %v752_v43 }
 0x1a3   : > { %4825 = vmatprep.mubr.msk.f32.mxu0 %vm772_vm2, %v753_v44  ;;  %v1114_v44 = vcombine.high %v1112_v32, %v1112_v32 }
 0x1a6   : > { %4826 = vmatmul.mubr.msk.f32.gmra.mxu0 %vm772_vm2, %v754_v45 }
 0x1a7   : > { %4828 = vmatprep.mubr.msk.f32.mxu0 %vm772_vm2, %v755_v46 }
 0x1aa   : > { %4829 = vmatmul.mubr.msk.f32.gmra.mxu0 %vm772_vm2, %v756_v47 }
 0x1ab   : > { %4831 = vmatprep.mubr.msk.f32.mxu0 %vm772_vm2, %v757_v48 }
 0x1ae   : > { %4832 = vmatmul.mubr.msk.f32.gmra.mxu0 %vm772_vm2, %v758_v49  ;;  %v1142_v49 = vrot.slane %v1114_v44, %v5966_v59 }
 0x1af   : > { %4834 = vmatprep.mubr.msk.f32.mxu0 %vm772_vm2, %v759_v50 }
 0x1b2   : > { %4835 = vmatmul.mubr.msk.f32.gmra.mxu0 %vm772_vm2, %v760_v51 }
 0x1b3   : > { %4897 = vmatprep.mubr.msk.f32.mxu0 %vm5569_vm3, %v5568_v52 }
 0x236   : > { %v4791_v61 = vpop.f32.mrf.mxu0 }
 0x237   : > { %v941_v62 = vadd.f32 %v4791_v61, %v5964_v58 }
 0x238   : > { %v935_v63 = vpop.f32.mrf.mxu0 }
 0x239   : > { %2680 = vrot.lane.b32.xlu0 %v941_v62, %s5571_s21  ;;  %4838 = vmatpush3.xpose.msk.msra.mxu1 %vm772_vm2, %v941_v62  ;;  %v936_v2 = vadd.f32 %v5964_v58, %v935_v63  ;;  %v6118_v62 = vrot.slane %v1147_v56, %v5966_v59 }
 0x23a   : > { %v4794_v1 = vpop.f32.mrf.mxu0  ;;  %4839 = vmatprep.subr.mxu1 %v5568_v52 }
 0x23b   : > { %v951_v3 = vadd.f32 %v4794_v1, %v5964_v58  ;;  %v1144_v1 = vcombine.high %v1128_v38, %v1128_v38 }
 0x23c   : > { %v945_v4 = vpop.f32.mrf.mxu0 }
 0x23d   : > { %2758 = vrot.lane.b32.xlu0 %v951_v3, %s5571_s21  ;;  %4840 = vmatpush3.xpose.msk.msra.mxu1 %vm772_vm2, %v936_v2  ;;  %v946_v10 = vadd.f32 %v5964_v58, %v945_v4 }
 0x23e   : > { %v4797_v6 = vpop.f32.mrf.mxu0  ;;  %4844 = vmatprep.subr.mxu1 %v5568_v52 }
 0x23f   : > { %v5991_v13 = vadd.f32 %v4797_v6, %v5964_v58 }
 0x240   : > { %v955_v7 = vpop.f32.mrf.mxu0  ;;  %4842 = vmatmul.mubr.msk.f32.vlgmr.msra.gmra.mxu1 %vm772_vm2, %v1121_v5  ;;  %v1177_v5 = vrot.slane %v6118_v62, %v5966_v59 }
 0x241   : > { %2678 = vrot.lane.b32.xlu0 %v936_v2, %s5571_s21  ;;  %4845 = vmatpush3.xpose.msk.msra.mxu1 %vm772_vm2, %v951_v3  ;;  %v6003_v17 = vadd.f32 %v5964_v58, %v955_v7 }
 0x242   : > { %v4800_v9 = vpop.f32.mrf.mxu0  ;;  %4846 = vmatprep.subr.mxu1 %v5568_v52  ;;  %4848 = vmatprep.mubr.msk.f32.mxu1 %vm5569_vm3, %v5568_v52 }
 0x243   : > { %v6006_v20 = vadd.f32 %v4800_v9, %v5964_v58 }
 0x244   : > { %v965_v11 = vpop.f32.mrf.mxu0 }
 0x245   : > { %2756 = vrot.lane.b32.xlu0 %v946_v10, %s5571_s21  ;;  %4847 = vmatpush3.xpose.msk.msra.mxu1 %vm772_vm2, %v946_v10  ;;  %v6022_v24 = vadd.f32 %v5964_v58, %v965_v11  ;;  %v1146_v10 = vcombine.high %v1142_v49, %v1142_v49 }
 0x246   : > { %v4803_v14 = vpop.f32.mrf.mxu0  ;;  %4851 = vmatprep.subr.mxu1 %v5568_v52 }
 0x247   : > { %v6029_v28 = vadd.f32 %v4803_v14, %v5964_v58  ;;  %v1162_v14 = vcombine.high %v6040_v34, %v6040_v34  ;;  %v6248_v34 = vpop.permute.xlu0 %2468 }
 0x248   : > { %v975_v15 = vpop.f32.mrf.mxu0  ;;  %4849 = vmatmul.mubr.msk.f32.vlgmr.msra.gmra.mxu1 %vm772_vm2, %v1135_v12  ;;  %v1193_v12 = vcombine.high %v1177_v5, %v1177_v5 }
 0x249   : > { %4852 = vmatpush3.xpose.msk.msra.mxu1 %vm772_vm2, %v5991_v13  ;;  %4855 = vmatprep.mubr.msk.f32.mxu1 %vm5569_vm3, %v5568_v52  ;;  %v6054_v37 = vadd.f32 %v5964_v58, %v975_v15 }
 0x24a   : > { %v4806_v16 = vpop.f32.mrf.mxu0  ;;  %4853 = vmatprep.subr.mxu1 %v5568_v52 }
 0x24b   : > { %v6064_v41 = vadd.f32 %v4806_v16, %v5964_v58  ;;  %v1184_v16 = vrot.slane %v1162_v14, %v5966_v59 }
 0x24c   : > { %v985_v19 = vpop.f32.mrf.mxu0 }
 0x24d   : > { %4854 = vmatpush3.xpose.msk.msra.mxu1 %vm772_vm2, %v6003_v17  ;;  %v6090_v48 = vadd.f32 %v5964_v58, %v985_v19 }
 0x24e   : > { %v4809_v21 = vpop.f32.mrf.mxu0  ;;  %4858 = vmatprep.subr.mxu1 %v5568_v52 }
 0x24f   : > { %v6099_v51 = vadd.f32 %v4809_v21, %v5964_v58  ;;  %v1194_v21 = vcombine.high %v1184_v16, %v1184_v16 }
 0x250   : > { %v6011_v22 = vpop.f32.mrf.mxu0  ;;  %4856 = vmatmul.mubr.msk.f32.vlgmr.msra.gmra.mxu1 %vm772_vm2, %v1143_v18 }
 0x251   : > { %4859 = vmatpush3.xpose.msk.msra.mxu1 %vm772_vm2, %v6006_v20  ;;  %4862 = vmatprep.mubr.msk.f32.mxu1 %vm5569_vm3, %v5568_v52  ;;  %v6122_v63 = vadd.f32 %v5964_v58, %v6011_v22 }
 0x252   : > { %v6018_v23 = vpop.f32.mrf.mxu0  ;;  %4860 = vmatprep.subr.mxu1 %v5568_v52 }
 0x253   : > { %v6134_v3 = vadd.f32 %v6018_v23, %v5964_v58  ;;  %v1163_v23 = vcombine.high %v6118_v62, %v6118_v62 }
 0x254   : > { %v6026_v26 = vpop.f32.mrf.mxu0 }
 0x255   : > { %4861 = vmatpush3.xpose.msk.msra.mxu1 %vm772_vm2, %v6022_v24  ;;  %v6156_v8 = vadd.f32 %v5964_v58, %v6026_v26 }
 0x256   : > { %v4815_v30 = vpop.f32.mrf.mxu0  ;;  %4865 = vmatprep.subr.mxu1 %v5568_v52 }
 0x257   : > { %v6035_v31 = vadd.f32 %v4815_v30, %v5964_v58 }
 0x258   : > { %v1015_v33 = vpop.f32.mrf.mxu0  ;;  %4863 = vmatmul.mubr.msk.f32.vlgmr.msra.gmra.mxu1 %vm772_vm2, %v1145_v27  ;;  %v1191_v27 = vrot.slane %v1163_v23, %v5966_v59 }
 0x259   : > { %v6043_v35 = vadd.f32 %v5964_v58, %v1015_v33  ;;  %4866 = vmatpush3.xpose.msk.msra.mxu1 %vm772_vm2, %v6029_v28  ;;  %4894 = vmatpush3.xpose.msk.msra.mxu0 %vm772_vm2, %v6035_v31 }
 0x25a   : > { %4867 = vmatprep.subr.mxu1 %v5568_v52  ;;  %4895 = vmatprep.subr.mxu0 %v5568_v52  ;;  %v6051_v36 = vpop.f32.mrf.mxu0  ;;  %v1195_v33 = vcombine.high %v1191_v27, %v1191_v27 }
 0x25b   : > { %4869 = vmatprep.mubr.msk.f32.mxu1 %vm5569_vm3, %v5568_v52  ;;  %v6170_v11 = vadd.f32 %v6051_v36, %v5964_v58  ;;  %v6250_v36 = vpop.permute.xlu0 %2471 }
 0x25c   : > { %v6059_v39 = vpop.f32.mrf.mxu0 }
 0x25d   : > { %4868 = vmatpush3.xpose.msk.msra.mxu1 %vm772_vm2, %v6054_v37  ;;  %4896 = vmatpush3.xpose.msk.msra.mxu0 %vm772_vm2, %v6043_v35  ;;  %v6187_v15 = vadd.f32 %v5964_v58, %v6059_v39 }
 0x25e   : > { %4872 = vmatprep.subr.mxu1 %v5568_v52  ;;  %v4821_v42 = vpop.f32.mrf.mxu0  ;;  %4907 = vmatprep.subr.mxu0 %v5568_v52 }
 0x25f   : > { %v6073_v43 = vadd.f32 %v4821_v42, %v5964_v58 }
 0x260   : > { %4870 = vmatmul.mubr.msk.f32.vlgmr.msra.gmra.mxu1 %vm772_vm2, %v1128_v38  ;;  %v1035_v45 = vpop.f32.mrf.mxu0  ;;  %4898 = vmatmul.mubr.msk.f32.vlgmr.msra.gmra.mxu0 %vm772_vm2, %v1170_v40 }
 0x261   : > { %4873 = vmatpush3.xpose.msk.msra.mxu1 %vm772_vm2, %v6064_v41  ;;  %4876 = vmatprep.mubr.msk.f32.mxu1 %vm5569_vm3, %v5568_v52  ;;  %v6083_v46 = vadd.f32 %v5964_v58, %v1035_v45 }
 0x262   : > { %4874 = vmatprep.subr.mxu1 %v5568_v52  ;;  %v6085_v47 = vpop.f32.mrf.mxu0  ;;  %4908 = vmatpush3.xpose.msk.msra.mxu0 %vm772_vm2, %v6073_v43 }
 0x263   : > { %4909 = vmatprep.subr.mxu0 %v5568_v52  ;;  %4911 = vmatprep.mubr.msk.f32.mxu0 %vm5569_vm3, %v5568_v52  ;;  %v6196_v18 = vadd.f32 %v6085_v47, %v5964_v58 }
 0x264   : > { %v6096_v50 = vpop.f32.mrf.mxu0 }
 0x265   : > { %4875 = vmatpush3.xpose.msk.msra.mxu1 %vm772_vm2, %v6090_v48  ;;  %v6207_v19 = vadd.f32 %v5964_v58, %v6096_v50 }
 0x266   : > { %4879 = vmatprep.subr.mxu1 %v5568_v52  ;;  %v4827_v53 = vpop.f32.mrf.mxu0  ;;  %4910 = vmatpush3.xpose.msk.msra.mxu0 %vm772_vm2, %v6083_v46 }
 0x267   : > { %v6107_v57 = vadd.f32 %v4827_v53, %v5964_v58  ;;  %4921 = vmatprep.subr.mxu0 %v5568_v52 }
 0x268   : > { %4877 = vmatmul.mubr.msk.f32.vlgmr.msra.gmra.mxu1 %vm772_vm2, %v1142_v49  ;;  %v1055_v60 = vpop.f32.mrf.mxu0 }
 0x269   : > { %4880 = vmatpush3.xpose.msk.msra.mxu1 %vm772_vm2, %v6099_v51  ;;  %4883 = vmatprep.mubr.msk.f32.mxu1 %vm5569_vm3, %v5568_v52  ;;  %v6125_v0 = vadd.f32 %v5964_v58, %v1055_v60 }
 0x26a   : > { %4881 = vmatprep.subr.mxu1 %v5568_v52  ;;  %v4830_v61 = vpop.f32.mrf.mxu0  ;;  %4912 = vmatmul.mubr.msk.f32.vlgmr.msra.gmra.mxu0 %vm772_vm2, %v1192_v54 }
 0x26b   : > { %4922 = vmatpush3.xpose.msk.msra.mxu0 %vm772_vm2, %v6107_v57  ;;  %4925 = vmatprep.mubr.msk.f32.mxu0 %vm5569_vm3, %v5568_v52  ;;  %v6212_v22 = vadd.f32 %v4830_v61, %v5964_v58 }
 0x26c   : > { %v1065_v2 = vpop.f32.mrf.mxu0  ;;  %4923 = vmatprep.subr.mxu0 %v5568_v52 }
 0x26d   : > { %4882 = vmatpush3.xpose.msk.msra.mxu1 %vm772_vm2, %v6122_v63  ;;  %v6224_v25 = vadd.f32 %v5964_v58, %v1065_v2 }
 0x26e   : > { %4886 = vmatprep.subr.mxu1 %v5568_v52  ;;  %v4833_v4 = vpop.f32.mrf.mxu0 }
 0x26f   : > { %v6142_v6 = vadd.f32 %v4833_v4, %v5964_v58  ;;  %4924 = vmatpush3.xpose.msk.msra.mxu0 %vm772_vm2, %v6125_v0 }
 0x270   : > { %4884 = vmatmul.mubr.msk.f32.vlgmr.msra.gmra.mxu1 %vm772_vm2, %v1144_v1  ;;  %v1075_v7 = vpop.f32.mrf.mxu0  ;;  %4935 = vmatprep.subr.mxu0 %v5568_v52 }
 0x271   : > { %4887 = vmatpush3.xpose.msk.msra.mxu1 %vm772_vm2, %v6134_v3  ;;  %4890 = vmatprep.mubr.msk.f32.mxu1 %vm5569_vm3, %v5568_v52  ;;  %v6159_v9 = vadd.f32 %v5964_v58, %v1075_v7 }
 0x272   : > { %4888 = vmatprep.subr.mxu1 %v5568_v52  ;;  %4926 = vmatmul.mubr.msk.f32.vlgmr.msra.gmra.mxu0 %vm772_vm2, %v1177_v5  ;;  %v4836_v26 = vpop.f32.mrf.mxu0 }
 0x273   : > { %4936 = vmatpush3.xpose.msk.msra.mxu0 %vm772_vm2, %v6142_v6  ;;  %4939 = vmatprep.mubr.msk.f32.mxu0 %vm5569_vm3, %v5568_v52  ;;  %v6230_v29 = vadd.f32 %v4836_v26, %v5964_v58  ;;  %v2462_v26 = vand.u32 127, %v1102_v55 }
 0x274   : > { %4937 = vmatprep.subr.mxu0 %v5568_v52  ;;  %v1085_v30 = vpop.f32.mrf.mxu0 }
 0x275   : > { %4889 = vmatpush3.xpose.msk.msra.mxu1 %vm772_vm2, %v6156_v8  ;;  %v6240_v32 = vadd.f32 %v5964_v58, %v1085_v30 }
 0x276   : > { %4900 = vmatprep.subr.mxu1 %v5568_v52 }
 0x277   : > { %4938 = vmatpush3.xpose.msk.msra.mxu0 %vm772_vm2, %v6159_v9 }
 0x278   : > { %4891 = vmatmul.mubr.msk.f32.vlgmr.msra.gmra.mxu1 %vm772_vm2, %v1146_v10  ;;  %4949 = vmatprep.subr.mxu0 %v5568_v52 }
 0x279   : > { %4901 = vmatpush3.xpose.msk.msra.mxu1 %vm772_vm2, %v6170_v11  ;;  %4904 = vmatprep.mubr.msk.f32.mxu1 %vm5569_vm3, %v5568_v52 }
 0x27a   : > { %4902 = vmatprep.subr.mxu1 %v5568_v52  ;;  %4940 = vmatmul.mubr.msk.f32.vlgmr.msra.gmra.mxu0 %vm772_vm2, %v1193_v12 }
 0x27b   : > { %4953 = vmatprep.mubr.msk.f32.mxu0 %vm5569_vm3, %v5568_v52 }
 0x27d   : > { %4903 = vmatpush3.xpose.msk.msra.mxu1 %vm772_vm2, %v6187_v15 }
 0x27e   : > { %4914 = vmatprep.subr.mxu1 %v5568_v52 }
 0x280   : > { %4905 = vmatmul.mubr.msk.f32.vlgmr.msra.gmra.mxu1 %vm772_vm2, %v1184_v16 }
 0x281   : > { %4915 = vmatpush3.xpose.msk.msra.mxu1 %vm772_vm2, %v6196_v18  ;;  %4918 = vmatprep.mubr.msk.f32.mxu1 %vm5569_vm3, %v5568_v52 }
 0x282   : > { %4916 = vmatprep.subr.mxu1 %v5568_v52 }
 0x285   : > { %4917 = vmatpush3.xpose.msk.msra.mxu1 %vm772_vm2, %v6207_v19 }
 0x286   : > { %4928 = vmatprep.subr.mxu1 %v5568_v52 }
 0x288   : > { %4919 = vmatmul.mubr.msk.f32.vlgmr.msra.gmra.mxu1 %vm772_vm2, %v1194_v21 }
 0x289   : > { %4929 = vmatpush3.xpose.msk.msra.mxu1 %vm772_vm2, %v6212_v22  ;;  %4932 = vmatprep.mubr.msk.f32.mxu1 %vm5569_vm3, %v5568_v52 }
 0x28a   : > { %4930 = vmatprep.subr.mxu1 %v5568_v52 }
 0x28d   : > { %4931 = vmatpush3.xpose.msk.msra.mxu1 %vm772_vm2, %v6224_v25 }
 0x28e   : > { %4942 = vmatprep.subr.mxu1 %v5568_v52 }
 0x290   : > { %4933 = vmatmul.mubr.msk.f32.vlgmr.msra.gmra.mxu1 %vm772_vm2, %v1191_v27 }
 0x291   : > { %4943 = vmatpush3.xpose.msk.msra.mxu1 %vm772_vm2, %v6230_v29  ;;  %4946 = vmatprep.mubr.msk.f32.mxu1 %vm5569_vm3, %v5568_v52 }
 0x292   : > { %4944 = vmatprep.subr.mxu1 %v5568_v52 }
 0x295   : > { %4945 = vmatpush3.xpose.msk.msra.mxu1 %vm772_vm2, %v6240_v32 }
 0x296   : > { %4956 = vmatprep.subr.mxu1 %v5568_v52 }
 0x298   : > { %4947 = vmatmul.mubr.msk.f32.vlgmr.msra.gmra.mxu1 %vm772_vm2, %v1195_v33  ;;  %v2463_v33 = vstv %s4580_s14 }
 0x299   : > { %4960 = vmatprep.mubr.msk.f32.mxu1 %vm5569_vm3, %v5568_v52 }
 0x2ab   : > { %v2681_v38 = vpop.permute.xlu0 %2680 }
 0x2ac   : > { %4950 = vmatpush3.msra.mxu0 %v2681_v38 }
 0x2ad   : > { %4951 = vmatprep.subr.mxu0 %v5568_v52 }
 0x2af   : > { %v2759_v58 = vpop.permute.xlu0 %2758 }
 0x2b0   : > { %4957 = vmatpush3.msra.mxu1 %v2759_v58 }
 0x2b1   : > { %4958 = vmatprep.subr.mxu1 %v5568_v52 }
 0x2b3   : > { %v2679_v39 = vpop.permute.xlu0 %2678 }
 0x2b4   : > { %4952 = vmatpush3.msra.mxu0 %v2679_v39 }
 0x2b5   : > { %4963 = vmatprep.subr.mxu0 %v5568_v52 }
 0x2b7   : > { %v2757_v40 = vpop.permute.xlu0 %2756 }
 0x2b8   : > { %4959 = vmatpush3.msra.mxu1 %v2757_v40 }
 0x2b9   : > { %4970 = vmatprep.subr.mxu1 %v5568_v52 }
 0x300   : > { %v1270_v42 = vpop.f32.mrf.mxu1 }
 0x301   : > { %v2444_v40 = vmul.f32 0.17677669, %v1270_v42 }
 0x302   : > { %v4843_v44 = vpop.f32.mrf.mxu1 }
 0x308   : > { %v1348_v45 = vpop.f32.mrf.mxu1 }
 0x309   : > { %v2445_v7 = vmul.f32 0.17677669, %v1348_v45 }
 0x30a   : > { %v4850_v47 = vpop.f32.mrf.mxu1 }
 0x30b   : > { %v2491_v27 = vrot.slane %v2445_v7, 7  ;;  %v2464_v47 = vadd.s32 %v2463_v33, %v2462_v26 }
 0x30d   : > { %vm2473_vm11 = vcmp.lt.s32.totalorder %v2464_v47, %v6248_v34  ;;  %vm2474_vm13 = vcmp.lt.s32.totalorder %v2464_v47, %v6250_v36  ;;  %v6290_v36 = vld [vmem:[#allocation3] sm:$0xff] }
 0x310   : > { %v1426_v49 = vpop.f32.mrf.mxu1 }
 0x311   : > { %v2446_v10 = vmul.f32 0.17677669, %v1426_v49  ;;  %v2493_v49 = vsel %vm2492_vm4, %v2491_v27, %v2444_v40 }
 0x312   : > { %v4857_v50 = vpop.f32.mrf.mxu1 }
 0x313   : > { %v2494_v38 = vrot.slane %v2446_v10, 6 }
 0x318   : > { %v1504_v53 = vpop.f32.mrf.mxu1 }
 0x319   : > { %v2447_v14 = vmul.f32 0.17677669, %v1504_v53  ;;  %v2496_v53 = vsel %vm2495_vm5, %v2494_v38, %v2493_v49 }
 0x31a   : > { %v4864_v54 = vpop.f32.mrf.mxu1 }
 0x31b   : > { %v2497_v44 = vrot.slane %v2447_v14, 5 }
 0x320   : > { %v1582_v56 = vpop.f32.mrf.mxu1  ;;  %v1894_v60 = vpop.f32.mrf.mxu0 }
 0x321   : > { %v2448_v16 = vmul.f32 0.17677669, %v1582_v56  ;;  %v2499_v56 = vsel %vm2498_vm6, %v2497_v44, %v2496_v53 }
 0x322   : > { %v4871_v61 = vpop.f32.mrf.mxu1  ;;  %v4899_v62 = vpop.f32.mrf.mxu0 }
 0x323   : > { %v2500_v45 = vrot.slane %v2448_v16, 4 }
 0x325   : > { %v2502_v42 = vsel %vm2501_vm7, %v2500_v45, %v2499_v56 }
 0x328   : > { %v1660_v1 = vpop.f32.mrf.mxu1 }
 0x329   : > { %v2449_v30 = vmul.f32 0.17677669, %v1660_v1 }
 0x32a   : > { %v4878_v2 = vpop.f32.mrf.mxu1  ;;  %v2050_v4 = vpop.f32.mrf.mxu0 }
 0x32b   : > { %v2503_v50 = vrot.slane %v2449_v30, 3  ;;  %v2454_v33 = vmul.f32 0.17677669, %v2050_v4 }
 0x32c   : > { %v4913_v5 = vpop.f32.mrf.mxu0 }
 0x32d   : > { %v2505_v2 = vsel %vm2504_vm8, %v2503_v50, %v2502_v42  ;;  %v2514_v40 = vrot.slane %v2454_v33, 6 }
 0x330   : > { %v1738_v12 = vpop.f32.mrf.mxu1 }
 0x331   : > { %v2450_v58 = vmul.f32 0.17677669, %v1738_v12 }
 0x332   : > { %v4885_v21 = vpop.f32.mrf.mxu1  ;;  %v2206_v23 = vpop.f32.mrf.mxu0 }
 0x333   : > { %v2506_v55 = vrot.slane %v2450_v58, 2  ;;  %v2456_v44 = vmul.f32 0.17677669, %v2206_v23 }
 0x334   : > { %v4927_v39 = vpop.f32.mrf.mxu0 }
 0x335   : > { %v2508_v7 = vsel %vm2507_vm9, %v2506_v55, %v2505_v2  ;;  %v2452_v39 = vmul.f32 0.17677669, %v1894_v60  ;;  %v2518_v56 = vrot.slane %v2456_v44, 4 }
 0x338   : > { %v1816_v54 = vpop.f32.mrf.mxu1 }
 0x339   : > { %v2451_v61 = vmul.f32 0.17677669, %v1816_v54 }
 0x33a   : > { %v4892_v62 = vpop.f32.mrf.mxu1  ;;  %v2362_v1 = vpop.f32.mrf.mxu0 }
 0x33b   : > { %v2509_v5 = vrot.slane %v2451_v61, 1  ;;  %v2458_v61 = vmul.f32 0.17677669, %v2362_v1 }
 0x33c   : > { %v4941_v10 = vpop.f32.mrf.mxu0 }
 0x33d   : > { %v2511_v12 = vsel %vm2510_vm10, %v2509_v5, %v2508_v7  ;;  %v2522_v2 = vrot.slane %v2458_v61, 2 }
 0x33e   : > { %v6266_v14 = vsel %vm2473_vm11, %v2511_v12, -1e+30 }
 0x33f   : > { %v2533_v16 = vsel %vm2532_vm12, %v6266_v14, -inf }
 0x340   : > { %2534 = vmax.xlane.f32.xlu1 %v2533_v16  ;;  %v1972_v21 = vpop.f32.mrf.mxu1 }
 0x341   : > { %v2453_v30 = vmul.f32 0.17677669, %v1972_v21 }
 0x342   : > { %v4906_v26 = vpop.f32.mrf.mxu1 }
 0x343   : > { %v2512_v38 = vrot.slane %v2453_v30, 7 }
 0x345   : > { %v2513_v49 = vsel %vm2492_vm4, %v2512_v38, %v2452_v39 }
 0x346   : > { %v2515_v54 = vsel %vm2495_vm5, %v2514_v40, %v2513_v49 }
 0x348   : > { %v2128_v27 = vpop.f32.mrf.mxu1 }
 0x349   : > { %v2455_v58 = vmul.f32 0.17677669, %v2128_v27 }
 0x34a   : > { %v4920_v34 = vpop.f32.mrf.mxu1 }
 0x34b   : > { %v2516_v50 = vrot.slane %v2455_v58, 5 }
 0x34d   : > { %v2517_v42 = vsel %vm2498_vm6, %v2516_v50, %v2515_v54 }
 0x34e   : > { %v2519_v4 = vsel %vm2501_vm7, %v2518_v56, %v2517_v42 }
 0x350   : > { %v2284_v45 = vpop.f32.mrf.mxu1 }
 0x351   : > { %v2457_v53 = vmul.f32 0.17677669, %v2284_v45 }
 0x352   : > { %v4934_v55 = vpop.f32.mrf.mxu1 }
 0x353   : > { %v2520_v62 = vrot.slane %v2457_v53, 3 }
 0x355   : > { %v2521_v60 = vsel %vm2504_vm8, %v2520_v62, %v2519_v4 }
 0x356   : > { %v2523_v12 = vsel %vm2507_vm9, %v2522_v2, %v2521_v60 }
 0x358   : > { %v2440_v5 = vpop.f32.mrf.mxu1 }
 0x359   : > { %v2459_v23 = vmul.f32 0.17677669, %v2440_v5 }
 0x35a   : > { %v4948_v7 = vpop.f32.mrf.mxu1 }
 0x35b   : > { %v2524_v10 = vrot.slane %v2459_v23, 1 }
 0x35d   : > { %v2525_v16 = vsel %vm2510_vm10, %v2524_v10, %v2523_v12 }
 0x35e   : > { %v6278_v21 = vsel %vm2474_vm13, %v2525_v16, -1e+30 }
 0x35f   : > { %v2536_v1 = vsel %vm2532_vm12, %v6278_v21, -inf }
 0x360   : > { %2537 = vmax.xlane.f32.xlu1 %v2536_v1 }
 0x371   : > { %2836 = vrot.lane.b32.xlu1 %v5991_v13, %s5571_s21  ;;  %v2531_v13 = vld [vmem:[#allocation3 + $0x8] sm:$0xff] }
 0x375   : > { %2834 = vrot.lane.b32.xlu1 %v6003_v17, %s5571_s21 }
 0x379   : > { %2992 = vrot.lane.b32.xlu1 %v6029_v28, %s5571_s21 }
 0x37d   : > { %2990 = vrot.lane.b32.xlu1 %v6054_v37, %s5571_s21 }
 0x3c9   : > { %v2535_v47 = vpop.xlane.xlu1 %2534 }
 0x3ca   : > { %v6293_v26 = vmax.f32 %v6290_v36, %v2535_v47 }
 0x3cc   : > { %v2541_v27 = vsub.f32 %v6290_v36, %v6293_v26  ;;  %3990 = vst.msk [vmem:[#allocation3] sm:$0xff] %vm2575_vm14, %v6293_v26  ;;  %2549 = vperm.xlu0 %5267, %v6293_v26  }
 0x3ce   : > { %v2543_v12 = vmul.f32 1.442695, %v2541_v27 }
 0x3d0   : > { %2914 = vrot.lane.b32.xlu0 %v6006_v20, %s5571_s21 }
 0x3d4   : > { %2912 = vrot.lane.b32.xlu0 %v6022_v24, %s5571_s21 }
 0x3d8   : > { %3070 = vrot.lane.b32.xlu0 %v6064_v41, %s5571_s21 }
 0x3dc   : > { %3068 = vrot.lane.b32.xlu0 %v6090_v48, %s5571_s21 }
 0x3e0   : > { %3226 = vrot.lane.b32.xlu0 %v6134_v3, %s5571_s21 }
 0x3e4   : > { %3224 = vrot.lane.b32.xlu0 %v6156_v8, %s5571_s21 }
 0x3e8   : > { %3382 = vrot.lane.b32.xlu0 %v6170_v11, %s5571_s21 }
 0x3e9   : > { %v2538_v17 = vpop.xlane.xlu1 %2537 }
 0x3ea   : > { %v2540_v20 = vmax.f32 %v2531_v13, %v2538_v17 }
 0x3ec   : > { %v2542_v28 = vsub.f32 %v2531_v13, %v2540_v20  ;;  %3991 = vst.msk [vmem:[#allocation3 + $0x8] sm:$0xff] %vm2575_vm14, %v2540_v20  ;;  %3380 = vrot.lane.b32.xlu0 %v6187_v15, %s5571_s21  ;;  %2554 = vperm.xlu1 %5268, %v2540_v20  }
 0x3ee   : > { %v2545_v3 = vmul.f32 1.442695, %v2542_v28 }
 0x3f0   : > { %3538 = vrot.lane.b32.xlu0 %v6196_v18, %s5571_s21  ;;  %3148 = vrot.lane.b32.xlu1 %v6099_v51, %s5571_s21 }
 0x3f4   : > { %3536 = vrot.lane.b32.xlu0 %v6207_v19, %s5571_s21  ;;  %3146 = vrot.lane.b32.xlu1 %v6122_v63, %s5571_s21 }
 0x3f8   : > { %3694 = vrot.lane.b32.xlu0 %v6212_v22, %s5571_s21  ;;  %3304 = vrot.lane.b32.xlu1 %v6035_v31, %s5571_s21 }
 0x3fc   : > { %3692 = vrot.lane.b32.xlu0 %v6224_v25, %s5571_s21  ;;  %3302 = vrot.lane.b32.xlu1 %v6043_v35, %s5571_s21 }
 0x400   : > { %3850 = vrot.lane.b32.xlu0 %v6230_v29, %s5571_s21  ;;  %3460 = vrot.lane.b32.xlu1 %v6073_v43, %s5571_s21  ;;  %v2837_v43 = vpop.permute.xlu1 %2836 }
 0x404   : > { %3848 = vrot.lane.b32.xlu0 %v6240_v32, %s5571_s21  ;;  %3458 = vrot.lane.b32.xlu1 %v6083_v46, %s5571_s21  ;;  %v2835_v48 = vpop.permute.xlu1 %2834 }
 0x408   : > { %3616 = vrot.lane.b32.xlu1 %v6107_v57, %s5571_s21  ;;  %v2993_v15 = vpop.permute.xlu1 %2992 }
 0x40c   : > { %3614 = vrot.lane.b32.xlu1 %v6125_v0, %s5571_s21  ;;  %v2991_v29 = vpop.permute.xlu1 %2990 }
 0x410   : > { %3772 = vrot.lane.b32.xlu1 %v6142_v6, %s5571_s21 }
 0x414   : > { %3770 = vrot.lane.b32.xlu1 %v6159_v9, %s5571_s21 }
 0x447   : > { %v2550_v24 = vpop.permute.xlu0 %2549 }
 0x448   : > { %v2557_v31 = vsub.f32 %v6266_v14, %v2550_v24 }
 0x44a   : > { %v2559_v35 = vmul.f32 1.442695, %v2557_v31 }
 0x44b   : > { %v2915_v37 = vpop.permute.xlu0 %2914 }
 0x44c   : > { %5271 = vpow2.f32 %v2559_v35 }
 0x44d   : > { %5273 = vpow2.f32 %v2545_v3 }
 0x44f   : > { %v2913_v41 = vpop.permute.xlu0 %2912 }
 0x453   : > { %v3071_v46 = vpop.permute.xlu0 %3070 }
 0x457   : > { %v3069_v51 = vpop.permute.xlu0 %3068 }
 0x459   : > { %v5272_v57 = vpop.eup %5271 }
 0x45a   : > { %v2567_v63 = vsel %vm2532_vm12, %v5272_v57, 0.0  ;;  %v2587_v0 = vrot.slane %v5272_v57, %v5966_v59  ;;  %v2580_v11 = vcombine.high %v5272_v57, %v5272_v57  ;;  %v6381_v45 = vpop.eup %5273  ;;  %v2564_v57 = vld [vmem:[#allocation4 + $0x8] sm:$0xff] }
 0x45b   : > { %v3227_v6 = vpop.permute.xlu0 %3226  ;;  %2568 = vadd.xlane.f32.xlu1 %v2567_v63  ;;  %v2566_v63 = vmul.f32 %v6381_v45, %v2564_v57 }
 0x45c   : > { %v2603_v8 = vrot.slane %v2587_v0, %v5966_v59  ;;  %v2595_v9 = vcombine.high %v2587_v0, %v2587_v0  ;;  %v2594_v22 = vrot.slane %v2580_v11, %v5966_v59 }
 0x45e   : > { %4954 = vmatmul.mubr.msk.f32.vlgmr.msra.gmra.mxu0 %vm2532_vm12, %v2603_v8  ;;  %v2617_v18 = vrot.slane %v2595_v9, %v5966_v59  ;;  %v2625_v25 = vcombine.high %v2603_v8, %v2603_v8  ;;  %v2596_v30 = vcombine.high %v2594_v22, %v2594_v22  ;;  %v2610_v34 = vrot.slane %v2594_v22, %v5966_v59 }
 0x45f   : > { %4964 = vmatpush3.msra.mxu0 %v2837_v43  ;;  %v3225_v19 = vpop.permute.xlu0 %3224  ;;  %4967 = vmatprep.mubr.msk.f32.mxu0 %vm5569_vm3, %v5568_v52  ;;  %v2563_v43 = vld [vmem:[#allocation4] sm:$0xff] }
 0x460   : > { %4965 = vmatprep.subr.mxu0 %v5568_v52  ;;  %4961 = vmatmul.mubr.msk.f32.vlgmr.msra.gmra.mxu1 %vm2532_vm12, %v2617_v18  ;;  %v2627_v14 = vcombine.high %v2617_v18, %v2617_v18  ;;  %v2624_v39 = vrot.slane %v2596_v30, %v5966_v59  ;;  %v2626_v55 = vcombine.high %v2610_v34, %v2610_v34 }
 0x461   : > { %4966 = vmatpush3.msra.mxu0 %v2835_v48  ;;  %4971 = vmatpush3.msra.mxu1 %v2915_v37 }
 0x462   : > { %4972 = vmatprep.subr.mxu1 %v5568_v52  ;;  %4977 = vmatprep.subr.mxu0 %v5568_v52  ;;  %v2628_v49 = vcombine.high %v2624_v39, %v2624_v39 }
 0x463   : > { %4968 = vmatmul.mubr.msk.f32.vlgmr.msra.gmra.mxu0 %vm2532_vm12, %v2625_v25  ;;  %4973 = vmatpush3.msra.mxu1 %v2913_v41  ;;  %v3383_v32 = vpop.permute.xlu0 %3382 }
 0x464   : > { %4978 = vmatpush3.msra.mxu0 %v2993_v15  ;;  %4974 = vmatprep.mubr.msk.f32.mxu1 %vm5569_vm3, %v5568_v52 }
 0x465   : > { %4984 = vmatprep.subr.mxu1 %v5568_v52  ;;  %4979 = vmatprep.subr.mxu0 %v5568_v52 }
 0x466   : > { %4975 = vmatmul.mubr.msk.f32.vlgmr.msra.gmra.mxu1 %vm2532_vm12, %v2627_v14  ;;  %4980 = vmatpush3.msra.mxu0 %v2991_v29 }
 0x467   : > { %4985 = vmatpush3.msra.mxu1 %v3071_v46  ;;  %4981 = vmatprep.mubr.msk.f32.mxu0 %vm5569_vm3, %v5568_v52  ;;  %v2555_v33 = vpop.permute.xlu1 %2554  ;;  %v3381_v38 = vpop.permute.xlu0 %3380 }
 0x468   : > { %4986 = vmatprep.subr.mxu1 %v5568_v52  ;;  %4982 = vmatmul.mubr.msk.f32.vlgmr.msra.gmra.mxu0 %vm2532_vm12, %v2610_v34  ;;  %v2558_v58 = vsub.f32 %v6278_v21, %v2555_v33 }
 0x469   : > { %4987 = vmatpush3.msra.mxu1 %v3069_v51  ;;  %4988 = vmatprep.mubr.msk.f32.mxu1 %vm5569_vm3, %v5568_v52 }
 0x46a   : > { %4998 = vmatprep.subr.mxu1 %v5568_v52  ;;  %v2561_v40 = vmul.f32 1.442695, %v2558_v58  ;;  %4989 = vmatmul.mubr.msk.f32.vlgmr.msra.gmra.mxu1 %vm2532_vm12, %v2624_v39 }
 0x46b   : > { %4999 = vmatpush3.msra.mxu1 %v3227_v6  ;;  %5002 = vmatprep.mubr.msk.f32.mxu1 %vm5569_vm3, %v5568_v52  ;;  %v3149_v44 = vpop.permute.xlu1 %3148  ;;  %v3539_v50 = vpop.permute.xlu0 %3538 }
 0x46c   : > { %5275 = vpow2.f32 %v2561_v40  ;;  %5000 = vmatprep.subr.mxu1 %v5568_v52  ;;  %4991 = vmatprep.subr.mxu0 %v5568_v52 }
 0x46d   : > { %5001 = vmatpush3.msra.mxu1 %v3225_v19  ;;  %3935 = vperm.xlu1 %5268, %v6381_v45   ;;  %5277 = vpow2.f32 %v2543_v12 }
 0x46e   : > { %5012 = vmatprep.subr.mxu1 %v5568_v52  ;;  %5003 = vmatmul.mubr.msk.f32.vlgmr.msra.gmra.mxu1 %vm2532_vm12, %v2628_v49 }
 0x46f   : > { %5013 = vmatpush3.msra.mxu1 %v3383_v32  ;;  %4992 = vmatpush3.msra.mxu0 %v3149_v44  ;;  %v3147_v53 = vpop.permute.xlu1 %3146  ;;  %v3537_v56 = vpop.permute.xlu0 %3536 }
 0x470   : > { %5014 = vmatprep.subr.mxu1 %v5568_v52  ;;  %4993 = vmatprep.subr.mxu0 %v5568_v52 }
 0x471   : > { %5015 = vmatpush3.msra.mxu1 %v3381_v38  ;;  %4994 = vmatpush3.msra.mxu0 %v3147_v53 }
 0x472   : > { %4995 = vmatprep.mubr.msk.f32.mxu0 %vm5569_vm3, %v5568_v52  ;;  %5005 = vmatprep.subr.mxu0 %v5568_v52 }
 0x473   : > { %4996 = vmatmul.mubr.msk.f32.vlgmr.msra.gmra.mxu0 %vm2532_vm12, %v2626_v55  ;;  %v3305_v54 = vpop.permute.xlu1 %3304  ;;  %5016 = vmatprep.mubr.msk.f32.mxu1 %vm5569_vm3, %v5568_v52  ;;  %v3695_v62 = vpop.permute.xlu0 %3694 }
 0x474   : > { %5006 = vmatpush3.msra.mxu0 %v3305_v54  ;;  %5009 = vmatprep.mubr.msk.f32.mxu0 %vm5569_vm3, %v5568_v52 }
 0x475   : > { %5007 = vmatprep.subr.mxu0 %v5568_v52  ;;  %5026 = vmatprep.subr.mxu1 %v5568_v52 }
 0x477   : > { %v3303_v61 = vpop.permute.xlu1 %3302  ;;  %v3693_v21 = vpop.permute.xlu0 %3692 }
 0x478   : > { %5008 = vmatpush3.msra.mxu0 %v3303_v61 }
 0x479   : > { %v5276_v42 = vpop.eup %5275  ;;  %5019 = vmatprep.subr.mxu0 %v5568_v52 }
 0x47a   : > { %v2570_v4 = vsel %vm2532_vm12, %v5276_v42, 0.0  ;;  %v2636_v2 = vrot.slane %v5276_v42, %v5966_v59  ;;  %v2629_v7 = vcombine.high %v5276_v42, %v5276_v42  ;;  %v5278_v41 = vpop.eup %5277 }
 0x47b   : > { %2571 = vadd.xlane.f32.xlu0 %v2570_v4  ;;  %v3461_v5 = vpop.permute.xlu1 %3460  ;;  %v3851_v13 = vpop.permute.xlu0 %3850  ;;  %v2565_v46 = vmul.f32 %v5278_v41, %v2563_v43  ;;  %v3927_v43 = vld [vmem:[#allocation5 + $0x8] sm:$0xff] }
 0x47c   : > { %v2652_v60 = vrot.slane %v2636_v2, %v5966_v59  ;;  %v2644_v23 = vcombine.high %v2636_v2, %v2636_v2  ;;  %v2643_v47 = vrot.slane %v2629_v7, %v5966_v59 }
 0x47e   : > { %5010 = vmatmul.mubr.msk.f32.vlgmr.msra.gmra.mxu0 %vm2532_vm12, %v2652_v60  ;;  %v2666_v10 = vrot.slane %v2644_v23, %v5966_v59  ;;  %v2674_v1 = vcombine.high %v2652_v60, %v2652_v60  ;;  %v2645_v27 = vcombine.high %v2643_v47, %v2643_v47  ;;  %v2659_v28 = vrot.slane %v2643_v47, %v5966_v59 }
 0x47f   : > { %5020 = vmatpush3.msra.mxu0 %v3461_v5  ;;  %v3459_v16 = vpop.permute.xlu1 %3458  ;;  %5023 = vmatprep.mubr.msk.f32.mxu0 %vm5569_vm3, %v5568_v52  ;;  %v3849_v31 = vpop.permute.xlu0 %3848 }
 0x480   : > { %5021 = vmatprep.subr.mxu0 %v5568_v52  ;;  %5017 = vmatmul.mubr.msk.f32.vlgmr.msra.gmra.mxu1 %vm2532_vm12, %v2666_v10  ;;  %v2676_v26 = vcombine.high %v2666_v10, %v2666_v10  ;;  %v2673_v20 = vrot.slane %v2645_v27, %v5966_v59  ;;  %v2675_v37 = vcombine.high %v2659_v28, %v2659_v28 }
 0x481   : > { %5022 = vmatpush3.msra.mxu0 %v3459_v16  ;;  %5027 = vmatpush3.msra.mxu1 %v3539_v50  ;;  %v3926_v50 = vld [vmem:[#allocation5] sm:$0xff] }
 0x482   : > { %5028 = vmatprep.subr.mxu1 %v5568_v52  ;;  %5024 = vmatmul.mubr.msk.f32.vlgmr.msra.gmra.mxu0 %vm2532_vm12, %v2674_v1  ;;  %v2677_v59 = vcombine.high %v2673_v20, %v2673_v20 }
 0x483   : > { %5029 = vmatpush3.msra.mxu1 %v3537_v56  ;;  %5030 = vmatprep.mubr.msk.f32.mxu1 %vm5569_vm3, %v5568_v52  ;;  %v3617_v36 = vpop.permute.xlu1 %3616 }
 0x484   : > { %5033 = vmatprep.subr.mxu0 %v5568_v52  ;;  %5040 = vmatprep.subr.mxu1 %v5568_v52 }
 0x485   : > { %5031 = vmatmul.mubr.msk.f32.vlgmr.msra.gmra.mxu1 %vm2532_vm12, %v2676_v26  ;;  %5034 = vmatpush3.msra.mxu0 %v3617_v36 }
 0x486   : > { %5041 = vmatpush3.msra.mxu1 %v3695_v62  ;;  %5035 = vmatprep.subr.mxu0 %v5568_v52 }
 0x487   : > { %5042 = vmatprep.subr.mxu1 %v5568_v52  ;;  %5044 = vmatprep.mubr.msk.f32.mxu1 %vm5569_vm3, %v5568_v52  ;;  %v3615_v17 = vpop.permute.xlu1 %3614 }
 0x488   : > { %5043 = vmatpush3.msra.mxu1 %v3693_v21  ;;  %5036 = vmatpush3.msra.mxu0 %v3615_v17 }
 0x489   : > { %5054 = vmatprep.subr.mxu1 %v5568_v52  ;;  %5037 = vmatprep.mubr.msk.f32.mxu0 %vm5569_vm3, %v5568_v52 }
 0x48a   : > { %5045 = vmatmul.mubr.msk.f32.vlgmr.msra.gmra.mxu1 %vm2532_vm12, %v2673_v20  ;;  %5038 = vmatmul.mubr.msk.f32.vlgmr.msra.gmra.mxu0 %vm2532_vm12, %v2659_v28 }
 0x48b   : > { %5055 = vmatpush3.msra.mxu1 %v3851_v13  ;;  %5047 = vmatprep.subr.mxu0 %v5568_v52  ;;  %v3773_v24 = vpop.permute.xlu1 %3772 }
 0x48c   : > { %5056 = vmatprep.subr.mxu1 %v5568_v52  ;;  %5058 = vmatprep.mubr.msk.f32.mxu1 %vm5569_vm3, %v5568_v52 }
 0x48d   : > { %5057 = vmatpush3.msra.mxu1 %v3849_v31  ;;  %5048 = vmatpush3.msra.mxu0 %v3773_v24 }
 0x48e   : > { %5059 = vmatmul.mubr.msk.f32.vlgmr.msra.gmra.mxu1 %vm2532_vm12, %v2677_v59  ;;  %5049 = vmatprep.subr.mxu0 %v5568_v52 }
 0x48f   : > { %v3771_v35 = vpop.permute.xlu1 %3770  ;;  %5051 = vmatprep.mubr.msk.f32.mxu0 %vm5569_vm3, %v5568_v52 }
 0x490   : > { %5050 = vmatpush3.msra.mxu0 %v3771_v35 }
 0x491   : > { %3930 = vperm.xlu0 %5267, %v5278_v41   ;;  %5052 = vmatmul.mubr.msk.f32.vlgmr.msra.gmra.mxu0 %vm2532_vm12, %v2675_v37 }
 0x4e4   : > { %v2569_v48 = vpop.xlane.xlu1 %2568 }
 0x4e5   : > { %v2573_v51 = vadd.f32 %v2569_v48, %v2565_v46 }
 0x4e7   : > { %2576 = vst.msk [vmem:[#allocation4] sm:$0xff] %vm2575_vm14, %v2573_v51 }
 0x4e8   : > { %v3936_v46 = vpop.permute.xlu1 %3935 }
 0x504   : > { %v2572_v0 = vpop.xlane.xlu0 %2571 }
 0x505   : > { %v2574_v3 = vadd.f32 %v2572_v0, %v2566_v63 }
 0x507   : > { %2577 = vst.msk [vmem:[#allocation4 + $0x8] sm:$0xff] %vm2575_vm14, %v2574_v3 }
 0x50c   : > { %v3931_v53 = vpop.permute.xlu0 %3930 }
 0x50d   : > { %v3938_v62 = vmul.f32 %v3931_v53, %v3926_v50 }
 0x51e   : > { %v2752_v52 = vpop.f32.mrf.mxu0 }
 0x520   : > { %v4955_v6 = vpop.f32.mrf.mxu0  ;;  %v2830_v8 = vpop.f32.mrf.mxu1 }
 0x521   : > { %v3956_v15 = vrot.slane %v2830_v8, 7 }
 0x522   : > { %v4962_v9 = vpop.f32.mrf.mxu1 }
 0x523   : > { %v2908_v11 = vpop.f32.mrf.mxu0  ;;  %v3957_v32 = vsel %vm2492_vm4, %v3956_v15, %v2752_v52  ;;  %v3939_v52 = vmul.f32 %v3936_v46, %v3927_v43 }
 0x524   : > { %v3958_v22 = vrot.slane %v2908_v11, 6 }
 0x525   : > { %v4969_v18 = vpop.f32.mrf.mxu0 }
 0x526   : > { %v2986_v19 = vpop.f32.mrf.mxu1  ;;  %v3959_v33 = vsel %vm2495_vm5, %v3958_v22, %v3957_v32 }
 0x527   : > { %v3960_v34 = vrot.slane %v2986_v19, 5 }
 0x528   : > { %v4976_v25 = vpop.f32.mrf.mxu1  ;;  %v3064_v29 = vpop.f32.mrf.mxu0 }
 0x529   : > { %v3962_v58 = vrot.slane %v3064_v29, 4  ;;  %v3961_v40 = vsel %vm2498_vm6, %v3960_v34, %v3959_v33 }
 0x52a   : > { %v4983_v14 = vpop.f32.mrf.mxu0  ;;  %v3142_v30 = vpop.f32.mrf.mxu1 }
 0x52b   : > { %v3964_v45 = vrot.slane %v3142_v30, 3  ;;  %v3963_v49 = vsel %vm2501_vm7, %v3962_v58, %v3961_v40 }
 0x52c   : > { %v4990_v38 = vpop.f32.mrf.mxu1 }
 0x52d   : > { %v3965_v56 = vsel %vm2504_vm8, %v3964_v45, %v3963_v49 }
 0x52e   : > { %v3298_v39 = vpop.f32.mrf.mxu1 }
 0x52f   : > { %v3968_v61 = vrot.slane %v3298_v39, 1 }
 0x530   : > { %v5004_v44 = vpop.f32.mrf.mxu1 }
 0x533   : > { %v3220_v55 = vpop.f32.mrf.mxu0 }
 0x534   : > { %v3966_v54 = vrot.slane %v3220_v55, 2 }
 0x535   : > { %v4997_v42 = vpop.f32.mrf.mxu0 }
 0x536   : > { %v3967_v4 = vsel %vm2507_vm9, %v3966_v54, %v3965_v56 }
 0x537   : > { %v3969_v2 = vsel %vm2510_vm10, %v3968_v61, %v3967_v4 }
 0x538   : > { %v3986_v5 = vadd.f32 %v3969_v2, %v3938_v62 }
 0x53a   : > { %3988 = vst.msk [vmem:[#allocation5] sm:$0xff] %vm772_vm2, %v3986_v5 }
 0x53e   : > { %v3376_v60 = vpop.f32.mrf.mxu0 }
 0x540   : > { %v5011_v23 = vpop.f32.mrf.mxu0  ;;  %v3454_v7 = vpop.f32.mrf.mxu1 }
 0x541   : > { %v3970_v21 = vrot.slane %v3454_v7, 7 }
 0x542   : > { %v5018_v10 = vpop.f32.mrf.mxu1  ;;  %v3532_v12 = vpop.f32.mrf.mxu0 }
 0x543   : > { %v3972_v36 = vrot.slane %v3532_v12, 6  ;;  %v3971_v26 = vsel %vm2492_vm4, %v3970_v21, %v3376_v60 }
 0x544   : > { %v5025_v16 = vpop.f32.mrf.mxu0 }
 0x545   : > { %v3610_v1 = vpop.f32.mrf.mxu1  ;;  %v3973_v20 = vsel %vm2495_vm5, %v3972_v36, %v3971_v26 }
 0x546   : > { %v3974_v17 = vrot.slane %v3610_v1, 5 }
 0x547   : > { %v5032_v47 = vpop.f32.mrf.mxu1 }
 0x548   : > { %v3975_v35 = vsel %vm2498_vm6, %v3974_v17, %v3973_v20 }
 0x54a   : > { %v3766_v27 = vpop.f32.mrf.mxu1  ;;  %v3688_v13 = vpop.f32.mrf.mxu0 }
 0x54b   : > { %v3976_v28 = vrot.slane %v3688_v13, 4  ;;  %v3978_v48 = vrot.slane %v3766_v27, 3 }
 0x54c   : > { %v5046_v24 = vpop.f32.mrf.mxu1  ;;  %v5039_v31 = vpop.f32.mrf.mxu0 }
 0x54d   : > { %v3977_v37 = vsel %vm2501_vm7, %v3976_v28, %v3975_v35 }
 0x54e   : > { %v3922_v59 = vpop.f32.mrf.mxu1  ;;  %v3979_v0 = vsel %vm2504_vm8, %v3978_v48, %v3977_v37 }
 0x54f   : > { %v3982_v63 = vrot.slane %v3922_v59, 1 }
 0x550   : > { %v5060_v41 = vpop.f32.mrf.mxu1 }
 0x551   : > { %v3844_v51 = vpop.f32.mrf.mxu0 }
 0x552   : > { %v3980_v57 = vrot.slane %v3844_v51, 2 }
 0x553   : > { %v5053_v3 = vpop.f32.mrf.mxu0 }
 0x554   : > { %v3981_v6 = vsel %vm2507_vm9, %v3980_v57, %v3979_v0  ;;  %3995 = sbr.rel (%p4597_p5) target bundleno = 2122 (0x84a), region = 104 }
 0x555   : > { %v3983_v8 = vsel %vm2510_vm10, %v3982_v63, %v3981_v6 }
 0x556   : > { %v3987_v9 = vadd.f32 %v3983_v8, %v3939_v52 }
 0x558   : > { %3989 = vst.msk [vmem:[#allocation5 + $0x8] sm:$0xff] %vm772_vm2, %v3987_v9 }
 0x559   : > { %v3998_v11 = vld [vmem:[#allocation4] sm:$0xff]  ;;  %v3999_v15 = vld [vmem:[#allocation4 + $0x8] sm:$0xff]  ;;  %v4017_v18 = vld [vmem:[#allocation12 + $0x18] sm:$0xff]  ;;  %v5572_v19 = vmov 0  }
 0x55a   : > { %5279 = vset.pattern.permute.xlu0 %v5572_v19  ;;  %5280 = vrcp.f32 %v3998_v11  ;;  %5061 = vmatprep.subr.mxu0 %v4017_v18  ;;  %v4016_v22 = vld [vmem:[#allocation12 + $0x10] sm:$0xff]  ;;  %v4015_v25 = vld [vmem:[#allocation12 + $0x8] sm:$0xff]  ;;  %v4014_v32 = vld [vmem:[#allocation12] sm:$0xff] }
 0x55b   : > { %5062 = vmatpush3.msra.mxu0 %v4017_v18  ;;  %5282 = vrcp.f32 %v3999_v15  ;;  %v4109_v30 = vld [vmem:[#allocation14 + $0x18] sm:$0xff]  ;;  %v3996_v34 = vld [vmem:[#allocation5] sm:$0xff]  ;;  %v4107_v45 = vld [vmem:[#allocation14 + $0x8] sm:$0xff] }
 0x55c   : > { %5063 = vmatprep.subr.mxu0 %v4016_v22  ;;  %5072 = vmatprep.subr.mxu1 %v4109_v30  ;;  %v4108_v44 = vld [vmem:[#allocation14 + $0x10] sm:$0xff]  ;;  %v4106_v49 = vld [vmem:[#allocation14] sm:$0xff]  ;;  %v4203_v61 = vld [vmem:[#allocation15 + $0x18] sm:$0xff] }
 0x55d   : > { %5064 = vmatpush3.msra.mxu0 %v4016_v22  ;;  %5073 = vmatpush3.msra.mxu1 %v4109_v30  ;;  %v4598_v53 = vld [vmem:[%s6606_s27] ss:$0 sm:$0xff]  ;;  %v4202_v42 = vld [vmem:[#allocation15 + $0x10] sm:$0xff]  ;;  %v4201_v62 = vld [vmem:[#allocation15 + $0x8] sm:$0xff] }
 0x55e   : > { %5065 = vmatprep.subr.mxu0 %v4015_v25  ;;  %5074 = vmatprep.subr.mxu1 %v4108_v44  ;;  %v4200_v4 = vld [vmem:[#allocation15] sm:$0xff] }
 0x55f   : > { %5066 = vmatpush3.msra.mxu0 %v4015_v25  ;;  %v3997_v58 = vld [vmem:[#allocation5 + $0x8] sm:$0xff]  ;;  %5075 = vmatpush3.msra.mxu1 %v4108_v44  ;;  %v4601_v2 = vld [vmem:[%s6607_s12] ss:$0 sm:$0xff] }
 0x560   : > { %5067 = vmatprep.subr.mxu0 %v4014_v32  ;;  %5076 = vmatprep.subr.mxu1 %v4107_v45  ;;  %v4604_v16 = vld [vmem:[%s6608_s25] ss:$0 sm:$0xff] }
 0x561   : > { %5068 = vmatpush3.msra.mxu0 %v4014_v32  ;;  %5077 = vmatpush3.msra.mxu1 %v4107_v45 }
 0x562   : > { %5078 = vmatprep.subr.mxu1 %v4106_v49  ;;  %5083 = vmatprep.subr.mxu0 %v4203_v61 }
 0x563   : > { %5079 = vmatpush3.msra.mxu1 %v4106_v49 }
 0x567   : > { %v5281_v29 = vpop.eup %5280 }
 0x568   : > { %4004 = vperm.xlu0 %5279, %v5281_v29   ;;  %v5283_v14 = vpop.eup %5282 }
 0x56c   : > { %4009 = vperm.xlu0 %5279, %v5283_v14  }
 0x5e3   : > { %v4005_v33 = vpop.permute.xlu0 %4004 }
 0x5e4   : > { %v4012_v38 = vmul.f32 %v4005_v33, %v3996_v34 }
 0x5e6   : > { %5069 = vmatprep.mubr.msk.f32.mxu0 %vm772_vm2, %v4012_v38 }
 0x5e7   : > { %v4010_v39 = vpop.permute.xlu0 %4009 }
 0x5e8   : > { %v4013_v40 = vmul.f32 %v4010_v39, %v3997_v58 }
 0x5ea   : > { %5070 = vmatmul.mubr.msk.f32.vlgmr.msra.gmra.mxu0 %vm772_vm2, %v4013_v40 }
 0x5eb   : > { %5084 = vmatpush3.msra.mxu0 %v4203_v61 }
 0x5ec   : > { %5085 = vmatprep.subr.mxu0 %v4202_v42 }
 0x5ed   : > { %5086 = vmatpush3.msra.mxu0 %v4202_v42 }
 0x5ee   : > { %5087 = vmatprep.subr.mxu0 %v4201_v62 }
 0x5ef   : > { %5088 = vmatpush3.msra.mxu0 %v4201_v62 }
 0x5f0   : > { %5089 = vmatprep.subr.mxu0 %v4200_v4 }
 0x5f1   : > { %5090 = vmatpush3.msra.mxu0 %v4200_v4 }
 0x6aa   : > { %v5071_v50 = vpop.f32.mrf.mxu0 }
 0x6ab   : > { %v4103_v56 = vadd.f32 %v5071_v50, %v4598_v53 }
 0x6ac   : > { %v4097_v55 = vpop.f32.mrf.mxu0 }
 0x6ad   : > { %v4098_v54 = vadd.f32 %v4598_v53, %v4097_v55 }
 0x6af   : > { %5080 = vmatprep.mubr.msk.f32.mxu1 %vm772_vm2, %v4098_v54 }
 0x6b0   : > { %5081 = vmatmul.mubr.msk.f32.vlgmr.msra.gmra.mxu1 %vm772_vm2, %v4103_v56 }
 0x770   : > { %v5082_v5 = vpop.f32.mrf.mxu1 }
 0x771   : > { %v4195_v60 = vadd.f32 %v5082_v5, %v4601_v2 }
 0x772   : > { %v4189_v23 = vpop.f32.mrf.mxu1 }
 0x773   : > { %v4190_v7 = vadd.f32 %v4601_v2, %v4189_v23 }
 0x775   : > { %5284 = vtanh.f32 %v4190_v7 }
 0x776   : > { %5286 = vtanh.f32 %v4195_v60 }
 0x782   : > { %v5285_v10 = vpop.eup %5284 }
 0x783   : > { %v5287_v12 = vpop.eup %5286  ;;  %5091 = vmatprep.mubr.msk.f32.mxu0 %vm772_vm2, %v5285_v10 }
 0x784   : > { %5092 = vmatmul.mubr.msk.f32.vlgmr.msra.gmra.mxu0 %vm772_vm2, %v5287_v12 }
 0x844   : > { %v5093_v21 = vpop.f32.mrf.mxu0 }
 0x845   : > { %v4289_v1 = vadd.f32 %v5093_v21, %v4604_v16 }
 0x846   : > { %v4283_v47 = vpop.f32.mrf.mxu0 }
 0x847   : > { %4293 = vst [vmem:[%s5876_s28 + $0x8] sm:$0xff] %v4289_v1  ;;  %v4284_v36 = vadd.f32 %v4604_v16, %v4283_v47 }
 0x849   : > { %4292 = vst [vmem:[%s5876_s28] sm:$0xff] %v4284_v36 }
 0x84a PF: > { %s4613_s10 = sshll.u32 %s5538_s15, 8  ;;  %s6609_s13 = sld [smem:[#allocation42_spill]] }
 0x84b   : > { %s4308_s19 = sshll.u32 %s5876_s28, 4  ;;  %s6489_s14 = scalar_lea.sflag [#allocation8], %s603_s5  ;;  %s6485_s19 = int_to_ptr.vmem [resolvable:$true] %s4308_s19 }
 0x84c   : > { %s5418_s4 = scalar_lea.vmem %s6485_s19, 256  ;;  %p6610_p1 = scmp.ne.s32.totalorder %s6590_s6, 0 }
 0x84d   : > { %p5419_p10 = scmp.ne.s32.totalorder %s6485_s19, %s5418_s4  ;;  %s5573_s15 = smov [#allocation17]  }
 0x84e   : > { %s5422_s1 = sshll.u32 %s5573_s15, 4  ;;  %s5423_s1 = int_to_ptr.vmem [resolvable:$false] %s5422_s1 }
 0x84f   : > { %p5420_p12 = pnand %p5419_p10, %p6610_p1  ;;  %s5424_s27 = scalar_lea.vmem %s5423_s1, 512 }
 0x850   : > { %s6482_s21 = scalar_lea.hbm %s6609_s13, %s4613_s10  ;;  %p5425_p4 = scmp.lt.s32.totalorder %s6485_s19, %s5423_s1 }
 0x851   : > { %p5421_p0 = pneg %p5420_p12  ;;  %p5426_p6 = scmp.lt.s32.totalorder %s5424_s27, %s5418_s4 }
 0x853   : > { %p5427_p8 = por %p5426_p6, %p5425_p4 }
 0x855   : > { %p5428_p2 = pnand %p5427_p8, %p5421_p0 }
 0x857   : > { %5431 = shalt.err (!%p5428_p2)
}
 0x858   : > { %s5432_s5 = scalar_lea.hbm %s6482_s21, 256  ;;  %s5436_s22 = scalar_lea.hbm %s6609_s13, 512 }
 0x859   : > { %p5433_p11 = scmp.ne.s32.totalorder %s6482_s21, %s5432_s5  ;;  %p5437_p3 = scmp.lt.s32.totalorder %s6482_s21, %s6609_s13 }
 0x85a   : > { %p5438_p7 = scmp.lt.s32.totalorder %s5436_s22, %s5432_s5 }
 0x85b   : > { %p5434_p13 = pnand %p5433_p11, %p6610_p1 }
 0x85c   : > { %p5439_p5 = por %p5438_p7, %p5437_p3 }
 0x85d   : > { %p5435_p9 = pneg %p5434_p13 }
 0x85f   : > { %p5440_p10 = pnand %p5439_p5, %p5435_p9 }
 0x861   : > { %5443 = shalt.err (!%p5440_p10)
}
 0x862   : > { %s5574_s3 = smov 128   ;;  %s5575_s25 = smov 8  }
 0x863   : > { %5123 = dma.vmem_to_hbm [thread:$0]  (%p6610_p1), %s6485_s19, 256, %s6482_s21, %s6489_s14, %s5574_s3, %s5574_s3, %s5575_s25  }
 0x864 PF: > { %s6611_s10 = sld [smem:[#allocation26_spill]]  ;;  %p5155_p12 = scmp.ge.s32.totalorder %s5550_s18, 2 }
 0x865   : > { %s6612_s20 = sld [smem:[#allocation33_spill]] }
 0x86a   : > { %s4323_s24 = sand.u32 1, %s6611_s10  }
 0x86b   : > { %p6613_p0 = scmp.ne.s32.totalorder %s6612_s20, 0  ;;  %s4324_s4 = scalar_lea.sflag [#allocation8], %s4323_s24 }
 0x86d   : > { %p5142_p4 = pnand %p5155_p12, %p6613_p0 }
 0x86f   : > { %p5143_p6 = pneg %p5142_p4 }
 0x871   : > { %5505 = dma.done.wait (%p5143_p6), %s4324_s4, 256  }
 0x872   : > { %5507 = vsyncadd (%p5143_p6), %s4324_s4, 4294967040  ;;  %s32_s18 = sadd.s32 1, %s5550_s18   ;;  %s6614_s15 = sld [smem:[#allocation27_spill]] }
 0x873   : > { %p29_p8 = scmp.ge.s32.totalorder %s32_s18, 6   ;;  %s6615_s27 = sld [smem:[#allocation31_spill]] }
 0x874   : > { %s6616_s6 = sld [smem:[#allocation32_spill]]  ;;  %s6619_s25 = smov %s5514_s26 }
 0x875   : > { %s6617_s21 = sld [smem:[#allocation29_spill]]  ;;  %s6621_s28 = smov %s5526_s29 }
 0x876   : > { %s6618_s19 = sld [smem:[#allocation30_spill]]  ;;  %s6622_s29 = smov %s5530_s30 }
 0x877   : > { %s6624_s14 = smov %s5542_s16 }
 0x878   : > { %s6620_s26 = smov %s6614_s15  ;;  %s6625_s15 = smov %s5546_s17 }
 0x879   :  { %31 = sbr.rel (!%p29_p8) target bundleno = 22 (0x16), region = 156 }
 0x87a   : > { %s6623_s30 = smov %s6616_s6 }
 0x87b   : > { %s6626_s16 = smov %s6617_s21 }
 0x87c   : > { %s6627_s17 = smov %s6618_s19 }
 0x87e   :  { %4329 = vsyncpa [#allocation7], 1 }
 0x87f   :  { %4331 = vsyncpa [#allocation7 + $0x1], 1 }
 0x880   :  { %4332 = vsyncpa [#allocation10], 1 }
 0x881   :  { %4333 = vsyncpa [#allocation13], 1 }
 0x882   :  { %4334 = vsyncpa [#allocation16], 1 }
 0x883   :  { %4335 = vsyncpa [#allocation8], 1 }
 0x884   :  { %4337 = vsyncpa [#allocation8 + $0x1], 1 }

</bundles_post_ra>
